<compile_context>
chip_gen: v7x
topology: tpu7x:2x2x1
jax: 0.10.0
libtpu: 0.0.40
codegen_flags: <defaults>
</compile_context>

<pallas_src>
import math
from collections import namedtuple

import jax
import jax.numpy as jnp
from jax import lax
from jax.experimental import pallas as pl
from jax.experimental.pallas import tpu as pltpu

_LANE = 128

_PairMeta = namedtuple(
    "_PairMeta",
    ["size", "padded_rows", "chunk_rows", "n_chunks", "itemsize_p", "itemsize_f"])


def _cdiv(a: int, b: int) -> int:
    return -(-a // b)


def _round_up(x: int, m: int) -> int:
    return ((x + m - 1) // m) * m


def _sublane_multiple(dtype) -> int:
    # (8,128) tile for 4-byte, (16,128) for 2-byte, (32,128) for 1-byte.
    return max(8, 32 // jnp.dtype(dtype).itemsize)


def _vmem_capacity_bytes() -> int:
    try:
        info = pltpu.get_tpu_info()
        cap = getattr(info, "vmem_capacity_bytes", None)
        if cap:
            return int(cap)
    except Exception:
        pass
    return 64 * 1024 * 1024  # conservative: v7x physical VMEM per TensorCore


def _pair_layout(size: int, mult: int, max_rows: int):
    """(padded_rows, chunk_rows, n_chunks) for one flattened feature pair."""
    rows = _round_up(_cdiv(size, _LANE), mult)
    if rows <= max_rows:
        return rows, rows, 1
    base = max(mult, (max_rows // mult) * mult)
    # Prefer a divisor of `rows` near the budgeted chunk so no row padding
    # (and hence no wrapper-side copy of a large tensor) is needed.
    chunk = 0
    d = base
    while d >= max(mult, base // 2):
        if rows % d == 0:
            chunk = d
            break
        d -= mult
    if chunk == 0:
        chunk = base  # rare: pad rows up to a multiple of the budgeted chunk
    n = _cdiv(rows, chunk)
    return n * chunk, chunk, n


def ensemble_knowledge_transfer_loss(logit, label, teacher_feature_preds,
                                     teacher_logit, teacher_features,
                                     teacher_logit_factor,
                                     teacher_feature_factor):
    """Forward pass of EnsembleKnowledgeTransferLoss (scalar float32)."""
    B, C = logit.shape
    preds = tuple(teacher_feature_preds)
    feats = tuple(teacher_features)
    assert len(preds) == len(feats) and len(preds) >= 1
    n_pairs = len(preds)

    tl_factor = float(teacher_logit_factor)
    tf_factor = float(teacher_feature_factor)

    # ------------------- chip-aware VMEM budget & chunking ------------------
    vmem_cap = _vmem_capacity_bytes()
    vmem_limit = min((vmem_cap * 3) // 4, 96 * 1024 * 1024)
    stream_budget = max(8 * 1024 * 1024, vmem_limit - 8 * 1024 * 1024)

    per_row_bytes = 0
    for p, f in zip(preds, feats):
        ip = jnp.dtype(p.dtype).itemsize
        i_f = jnp.dtype(f.dtype).itemsize
        # 2 pipeline buffers per streamed tensor + headroom for f32 temporaries.
        per_row_bytes += _LANE * (2 * (ip + i_f) + 24)
    max_rows = max(32, ((stream_budget // per_row_bytes) // 32) * 32)

    metas = []
    pair_arrays = []
    for p, f in zip(preds, feats):
        assert p.shape == f.shape, "pred/feature shape mismatch"
        size = int(math.prod(p.shape))
        mult = max(_sublane_multiple(p.dtype), _sublane_multiple(f.dtype))
        padded_rows, chunk_rows, n_chunks = _pair_layout(size, mult, max_rows)
        metas.append(_PairMeta(size, padded_rows, chunk_rows, n_chunks,
                               jnp.dtype(p.dtype).itemsize,
                               jnp.dtype(f.dtype).itemsize))
        padded_size = padded_rows * _LANE
        for t in (p, f):
            flat = jnp.reshape(t, (-1,))
            if padded_size != size:
                # Zero-pad both pred & feature: pad region contributes 0 to
                # the squared-diff sum; the true `size` is used for the mean.
                flat = jnp.pad(flat, (0, padded_size - size))
            pair_arrays.append(jnp.reshape(flat, (n_chunks, chunk_rows, _LANE)))

    total_chunks = max(m.n_chunks for m in metas)
    half = _cdiv(total_chunks, 2)          # chunks handled by each core-shard
    label_col = label.astype(jnp.int32).reshape(B, 1)

    # ------------------------------- kernel ---------------------------------
    def kernel(*refs):
        label_ref, logit_ref, tlogit_ref = refs[0], refs[1], refs[2]
        pair_refs = refs[3:3 + 2 * n_pairs]
        out_ref = refs[3 + 2 * n_pairs]
        acc_ref = refs[4 + 2 * n_pairs]

        c = pl.program_id(0)               # TensorCore shard (v7x megacore)
        k = pl.program_id(1)               # chunk step within the shard
        chunk = c * half + k

        @pl.when(k == 0)
        def _init():
            acc_ref[...] = jnp.zeros_like(acc_ref)

        # Streamed teacher-feature squared-diff accumulation (pure VPU adds;
        # the single cross-lane reduce per pair happens once in the epilogue).
        for i, m in enumerate(metas):
            p_ref = pair_refs[2 * i]
            f_ref = pair_refs[2 * i + 1]

            def _accumulate(i=i, p_ref=p_ref, f_ref=f_ref, m=m):
                d = p_ref[0].astype(jnp.float32) - f_ref[0].astype(jnp.float32)
                d2 = (d * d).reshape(m.chunk_rows // 8, 8, _LANE)
                acc_ref[i] = acc_ref[i] + jnp.sum(d2, axis=0)

            if m.n_chunks == 2 * half:
                _accumulate()
            else:
                pl.when(chunk < m.n_chunks)(_accumulate)

        def _feature_partial():
            s = jnp.float32(0.0)
            for i, m in enumerate(metas):
                s = s + jnp.sum(acc_ref[i]) * (1.0 / m.size)
            return tf_factor * s

        last = k == half - 1

        @pl.when(jnp.logical_and(last, c == 0))
        def _finalize_core0():
            logits = logit_ref[...].astype(jnp.float32)     # [B, C]
            tlogits = tlogit_ref[...].astype(jnp.float32)

            # Cross entropy (mean over batch): one vectorized one-hot compare.
            mx = jnp.max(logits, axis=-1, keepdims=True)
            z = logits - mx
            lse = jnp.log(jnp.sum(jnp.exp(z), axis=-1, keepdims=True))  # [B,1]
            col = lax.broadcasted_iota(jnp.int32, (B, C), 1)
            hit = col == label_ref[...]                     # (B,C) vs (B,1)
            tgt = jnp.sum(jnp.where(hit, z, 0.0), axis=-1, keepdims=True)
            ce = jnp.mean(lse - tgt)

            # Teacher-logit MSE.
            dl = logits - tlogits
            mse_logit = jnp.sum(dl * dl) * (1.0 / (B * C))

            total = ce + tl_factor * mse_logit + _feature_partial()
            out_ref[...] = jnp.full((1, 8, _LANE), total, dtype=jnp.float32)

        @pl.when(jnp.logical_and(last, c > 0))
        def _finalize_rest():
            out_ref[...] = jnp.full((1, 8, _LANE), _feature_partial(),
                                    dtype=jnp.float32)

    # ------------------------------- specs ----------------------------------
    const_map = lambda c, k: (0, 0)
    in_specs = [
        pl.BlockSpec((B, 1), const_map),      # labels (int32, VMEM)
        pl.BlockSpec((B, C), const_map),      # student logits (resident)
        pl.BlockSpec((B, C), const_map),      # teacher logits (resident)
    ]
    for m in metas:
        if m.n_chunks == 2 * half:
            imap = lambda c, k, h=half: (c * h + k, 0, 0)
        else:
            imap = (lambda c, k, h=half, n=m.n_chunks:
                    (jnp.minimum(c * h + k, n - 1), 0, 0))
        spec = pl.BlockSpec((1, m.chunk_rows, _LANE), imap)
        in_specs += [spec, spec]

    total_feat = sum(m.size for m in metas)
    feat_bytes = sum(m.size * (m.itemsize_p + m.itemsize_f) for m in metas)
    logit_bytes = B * C * (jnp.dtype(logit.dtype).itemsize
                           + jnp.dtype(teacher_logit.dtype).itemsize)
    cost = pl.CostEstimate(
        flops=3 * total_feat + 12 * B * C,
        transcendentals=B * C,
        bytes_accessed=feat_bytes + logit_bytes + 4 * B + 2 * 8 * _LANE * 4,
    )

    partials = pl.pallas_call(
        kernel,
        grid=(2, half),
        in_specs=in_specs,
        out_specs=pl.BlockSpec((1, 8, _LANE), lambda c, k: (c, 0, 0)),
        out_shape=jax.ShapeDtypeStruct((2, 8, _LANE), jnp.float32),
        scratch_shapes=[pltpu.VMEM((n_pairs, 8, _LANE), jnp.float32)],
        compiler_params=pltpu.CompilerParams(
            dimension_semantics=("parallel", "arbitrary"),
            vmem_limit_bytes=int(vmem_limit)),
        cost_estimate=cost,
    )(label_col, logit, teacher_logit, *pair_arrays)

    # Combine the two per-core partial scalars (tiny XLA op).
    return jnp.sum(partials[:, 0, 0])


# ------------------------------ reference -----------------------------------
def _reference_loss(logit, label, preds, tlogit, feats, lf, ff):
    x = logit.astype(jnp.float32)
    lse = jax.scipy.special.logsumexp(x, axis=-1)
    tgt = jnp.take_along_axis(x, label.astype(jnp.int32)[:, None], axis=-1)[:, 0]
    ce = jnp.mean(lse - tgt)

    def mse(a, b):
        return jnp.mean(jnp.square(a.astype(jnp.float32) - b.astype(jnp.float32)))

    feat = sum(mse(p, f) for p, f in zip(preds, feats))
    return ce + lf * mse(x, tlogit) + ff * feat


# --------------------------------- main --------------------------------------
if __name__ == "__main__":
    key = jax.random.PRNGKey(0)
    B, C = 2, 32
    feat_shapes = [
        (B, 64, 32, 32),   # 131072 elems -> single streamed chunk (1024, 128)
        (B, 8, 16, 16),    # 4096 elems   -> single streamed chunk (32, 128)
        (B, 3, 5, 7),      # 210 elems    -> zero-padded to one (8, 128) chunk
    ]

    ks = jax.random.split(key, 3 + 2 * len(feat_shapes))
    logit = jax.random.normal(ks[0], (B, C), jnp.float32)
    label = jax.random.randint(ks[1], (B,), 0, C, dtype=jnp.int32)
    teacher_logit = jax.random.normal(ks[2], (B, C), jnp.float32)
    teacher_feature_preds = tuple(
        jax.random.normal(ks[3 + i], s, jnp.float32)
        for i, s in enumerate(feat_shapes))
    teacher_features = tuple(
        jax.random.normal(ks[3 + len(feat_shapes) + i], s, jnp.float32)
        for i, s in enumerate(feat_shapes))

    teacher_logit_factor = 0.5
    teacher_feature_factor = 0.1

    loss_fn = jax.jit(
        ensemble_knowledge_transfer_loss,
        static_argnames=("teacher_logit_factor", "teacher_feature_factor"))
    loss = loss_fn(logit, label, teacher_feature_preds, teacher_logit,
                   teacher_features,
                   teacher_logit_factor=teacher_logit_factor,
                   teacher_feature_factor=teacher_feature_factor)
    jax.block_until_ready(loss)

    ref = _reference_loss(logit, label, teacher_feature_preds, teacher_logit,
                          teacher_features, teacher_logit_factor,
                          teacher_feature_factor)
    if not jnp.allclose(loss, ref, rtol=1e-4, atol=1e-5):
        raise RuntimeError(f"mismatch: kernel={loss} reference={ref}")
    print("KERNEL_OK")
</pallas_src>

<mosaic_0001>
module attributes {stable_mosaic.version = 11 : i64} {
  func.func @kernel(%arg0: i32, %arg1: i32, %arg2: memref<2x1xi32, #tpu.memory_space<vmem>>, %arg3: memref<2x32xf32, #tpu.memory_space<vmem>>, %arg4: memref<2x32xf32, #tpu.memory_space<vmem>>, %arg5: memref<1x1024x128xf32, #tpu.memory_space<vmem>>, %arg6: memref<1x1024x128xf32, #tpu.memory_space<vmem>>, %arg7: memref<1x32x128xf32, #tpu.memory_space<vmem>>, %arg8: memref<1x32x128xf32, #tpu.memory_space<vmem>>, %arg9: memref<1x8x128xf32, #tpu.memory_space<vmem>>, %arg10: memref<1x8x128xf32, #tpu.memory_space<vmem>>, %arg11: memref<1x8x128xf32, #tpu.memory_space<vmem>>, %arg12: memref<3x8x128xf32, #tpu.memory_space<vmem>>) attributes {dimension_semantics = [#tpu.dimension_semantics<parallel>, #tpu.dimension_semantics<arbitrary>], iteration_bounds = array<i64: 2, 1>, scalar_prefetch = 0 : i64, scratch_operands = 1 : i64, tpu.core_type = #tpu.core_type<tc>, window_params = [{pipeline_mode = #tpu.pipeline_mode<synchronous>, transform_indices = @transform_0, window_bounds = array<i64: 2, 1>}, {pipeline_mode = #tpu.pipeline_mode<synchronous>, transform_indices = @transform_1, window_bounds = array<i64: 2, 32>}, {pipeline_mode = #tpu.pipeline_mode<synchronous>, transform_indices = @transform_2, window_bounds = array<i64: 2, 32>}, {transform_indices = @transform_3, window_bounds = array<i64: 1, 1024, 128>}, {transform_indices = @transform_4, window_bounds = array<i64: 1, 1024, 128>}, {transform_indices = @transform_5, window_bounds = array<i64: 1, 32, 128>}, {transform_indices = @transform_6, window_bounds = array<i64: 1, 32, 128>}, {transform_indices = @transform_7, window_bounds = array<i64: 1, 8, 128>}, {transform_indices = @transform_8, window_bounds = array<i64: 1, 8, 128>}, {transform_indices = @transform_9, window_bounds = array<i64: 1, 8, 128>}]} {
    %c1_i32 = arith.constant 1 : i32
    %0 = arith.muli %arg0, %c1_i32 : i32
    %1 = arith.addi %0, %arg1 : i32
    %c0_i32 = arith.constant 0 : i32
    %2 = arith.cmpi eq, %arg1, %c0_i32 : i32
    %3 = arith.extui %2 : i1 to i32
    %c0_i32_0 = arith.constant 0 : i32
    %4 = arith.cmpi ne, %3, %c0_i32_0 : i32
    scf.if %4 {
      %cst = arith.constant 0.000000e+00 : f32
      %23 = vector.broadcast %cst : f32 to vector<3x8x128xf32>
      %c0 = arith.constant 0 : index
      %c0_12 = arith.constant 0 : index
      %c0_13 = arith.constant 0 : index
      %24 = vector.load %arg12[%c0, %c0_12, %c0_13] : memref<3x8x128xf32, #tpu.memory_space<vmem>>, vector<3x8x128xf32>
      tpu.vector_store %arg12[%c0, %c0_12, %c0_13], %23 {strides = array<i32>} : memref<3x8x128xf32, #tpu.memory_space<vmem>>, vector<3x8x128xf32>,
    } else {
    }
    %c1_i32_1 = arith.constant 1 : i32
    %5 = arith.cmpi slt, %1, %c1_i32_1 : i32
    %6 = arith.extui %5 : i1 to i32
    %c0_i32_2 = arith.constant 0 : i32
    %7 = arith.cmpi ne, %6, %c0_i32_2 : i32
    scf.if %7 {
      %c0 = arith.constant 0 : index
      %c0_12 = arith.constant 0 : index
      %c0_13 = arith.constant 0 : index
      %23 = vector.load %arg5[%c0, %c0_12, %c0_13] : memref<1x1024x128xf32, #tpu.memory_space<vmem>>, vector<1x1024x128xf32>
      %24 = vector.shape_cast %23 : vector<1x1024x128xf32> to vector<1024x128xf32>
      %c0_14 = arith.constant 0 : index
      %c0_15 = arith.constant 0 : index
      %c0_16 = arith.constant 0 : index
      %25 = vector.load %arg6[%c0_14, %c0_15, %c0_16] : memref<1x1024x128xf32, #tpu.memory_space<vmem>>, vector<1x1024x128xf32>
      %26 = vector.shape_cast %25 : vector<1x1024x128xf32> to vector<1024x128xf32>
      %27 = arith.subf %24, %26 : vector<1024x128xf32>
      %28 = arith.mulf %27, %27 : vector<1024x128xf32>
      %29 = vector.shape_cast %28 : vector<1024x128xf32> to vector<128x8x128xf32>
      %c0_17 = arith.constant 0 : index
      %c0_18 = arith.constant 0 : index
      %c0_19 = arith.constant 0 : index
      %30 = vector.load %arg12[%c0_17, %c0_18, %c0_19] : memref<3x8x128xf32, #tpu.memory_space<vmem>>, vector<1x8x128xf32>
      %31 = vector.shape_cast %30 : vector<1x8x128xf32> to vector<8x128xf32>
      %cst = arith.constant dense<0.000000e+00> : vector<8x128xf32>
      %32 = vector.multi_reduction <add>, %29, %cst [0] : vector<128x8x128xf32> to vector<8x128xf32>
      %33 = arith.addf %31, %32 : vector<8x128xf32>
      %c0_20 = arith.constant 0 : index
      %c0_21 = arith.constant 0 : index
      %c0_22 = arith.constant 0 : index
      %34 = vector.load %arg12[%c0_20, %c0_21, %c0_22] : memref<3x8x128xf32, #tpu.memory_space<vmem>>, vector<1x8x128xf32>
      %35 = vector.shape_cast %34 : vector<1x8x128xf32> to vector<8x128xf32>
      %36 = vector.shape_cast %33 : vector<8x128xf32> to vector<1x8x128xf32>
      tpu.vector_store %arg12[%c0_20, %c0_21, %c0_22], %36 {strides = array<i32>} : memref<3x8x128xf32, #tpu.memory_space<vmem>>, vector<1x8x128xf32>,
    } else {
    }
    %c1_i32_3 = arith.constant 1 : i32
    %8 = arith.cmpi slt, %1, %c1_i32_3 : i32
    %9 = arith.extui %8 : i1 to i32
    %c0_i32_4 = arith.constant 0 : i32
    %10 = arith.cmpi ne, %9, %c0_i32_4 : i32
    scf.if %10 {
      %c0 = arith.constant 0 : index
      %c0_12 = arith.constant 0 : index
      %c0_13 = arith.constant 0 : index
      %23 = vector.load %arg7[%c0, %c0_12, %c0_13] : memref<1x32x128xf32, #tpu.memory_space<vmem>>, vector<1x32x128xf32>
      %24 = vector.shape_cast %23 : vector<1x32x128xf32> to vector<32x128xf32>
      %c0_14 = arith.constant 0 : index
      %c0_15 = arith.constant 0 : index
      %c0_16 = arith.constant 0 : index
      %25 = vector.load %arg8[%c0_14, %c0_15, %c0_16] : memref<1x32x128xf32, #tpu.memory_space<vmem>>, vector<1x32x128xf32>
      %26 = vector.shape_cast %25 : vector<1x32x128xf32> to vector<32x128xf32>
      %27 = arith.subf %24, %26 : vector<32x128xf32>
      %28 = arith.mulf %27, %27 : vector<32x128xf32>
      %29 = vector.shape_cast %28 : vector<32x128xf32> to vector<4x8x128xf32>
      %c1 = arith.constant 1 : index
      %c0_17 = arith.constant 0 : index
      %c0_18 = arith.constant 0 : index
      %30 = vector.load %arg12[%c1, %c0_17, %c0_18] : memref<3x8x128xf32, #tpu.memory_space<vmem>>, vector<1x8x128xf32>
      %31 = vector.shape_cast %30 : vector<1x8x128xf32> to vector<8x128xf32>
      %cst = arith.constant dense<0.000000e+00> : vector<8x128xf32>
      %32 = vector.multi_reduction <add>, %29, %cst [0] : vector<4x8x128xf32> to vector<8x128xf32>
      %33 = arith.addf %31, %32 : vector<8x128xf32>
      %c1_19 = arith.constant 1 : index
      %c0_20 = arith.constant 0 : index
      %c0_21 = arith.constant 0 : index
      %34 = vector.load %arg12[%c1_19, %c0_20, %c0_21] : memref<3x8x128xf32, #tpu.memory_space<vmem>>, vector<1x8x128xf32>
      %35 = vector.shape_cast %34 : vector<1x8x128xf32> to vector<8x128xf32>
      %36 = vector.shape_cast %33 : vector<8x128xf32> to vector<1x8x128xf32>
      tpu.vector_store %arg12[%c1_19, %c0_20, %c0_21], %36 {strides = array<i32>} : memref<3x8x128xf32, #tpu.memory_space<vmem>>, vector<1x8x128xf32>,
    } else {
    }
    %c1_i32_5 = arith.constant 1 : i32
    %11 = arith.cmpi slt, %1, %c1_i32_5 : i32
    %12 = arith.extui %11 : i1 to i32
    %c0_i32_6 = arith.constant 0 : i32
    %13 = arith.cmpi ne, %12, %c0_i32_6 : i32
    scf.if %13 {
      %c0 = arith.constant 0 : index
      %c0_12 = arith.constant 0 : index
      %c0_13 = arith.constant 0 : index
      %23 = vector.load %arg9[%c0, %c0_12, %c0_13] : memref<1x8x128xf32, #tpu.memory_space<vmem>>, vector<1x8x128xf32>
      %24 = vector.shape_cast %23 : vector<1x8x128xf32> to vector<8x128xf32>
      %c0_14 = arith.constant 0 : index
      %c0_15 = arith.constant 0 : index
      %c0_16 = arith.constant 0 : index
      %25 = vector.load %arg10[%c0_14, %c0_15, %c0_16] : memref<1x8x128xf32, #tpu.memory_space<vmem>>, vector<1x8x128xf32>
      %26 = vector.shape_cast %25 : vector<1x8x128xf32> to vector<8x128xf32>
      %27 = arith.subf %24, %26 : vector<8x128xf32>
      %28 = arith.mulf %27, %27 : vector<8x128xf32>
      %29 = vector.shape_cast %28 : vector<8x128xf32> to vector<1x8x128xf32>
      %c2 = arith.constant 2 : index
      %c0_17 = arith.constant 0 : index
      %c0_18 = arith.constant 0 : index
      %30 = vector.load %arg12[%c2, %c0_17, %c0_18] : memref<3x8x128xf32, #tpu.memory_space<vmem>>, vector<1x8x128xf32>
      %31 = vector.shape_cast %30 : vector<1x8x128xf32> to vector<8x128xf32>
      %cst = arith.constant dense<0.000000e+00> : vector<8x128xf32>
      %32 = vector.multi_reduction <add>, %29, %cst [0] : vector<1x8x128xf32> to vector<8x128xf32>
      %33 = arith.addf %31, %32 : vector<8x128xf32>
      %c2_19 = arith.constant 2 : index
      %c0_20 = arith.constant 0 : index
      %c0_21 = arith.constant 0 : index
      %34 = vector.load %arg12[%c2_19, %c0_20, %c0_21] : memref<3x8x128xf32, #tpu.memory_space<vmem>>, vector<1x8x128xf32>
      %35 = vector.shape_cast %34 : vector<1x8x128xf32> to vector<8x128xf32>
      %36 = vector.shape_cast %33 : vector<8x128xf32> to vector<1x8x128xf32>
      tpu.vector_store %arg12[%c2_19, %c0_20, %c0_21], %36 {strides = array<i32>} : memref<3x8x128xf32, #tpu.memory_space<vmem>>, vector<1x8x128xf32>,
    } else {
    }
    %c0_i32_7 = arith.constant 0 : i32
    %14 = arith.cmpi eq, %arg1, %c0_i32_7 : i32
    %c0_i32_8 = arith.constant 0 : i32
    %15 = arith.cmpi eq, %arg0, %c0_i32_8 : i32
    %16 = arith.andi %14, %15 : i1
    %17 = arith.extui %16 : i1 to i32
    %c0_i32_9 = arith.constant 0 : i32
    %18 = arith.cmpi ne, %17, %c0_i32_9 : i32
    scf.if %18 {
      %c0 = arith.constant 0 : index
      %c0_12 = arith.constant 0 : index
      %23 = vector.load %arg3[%c0, %c0_12] : memref<2x32xf32, #tpu.memory_space<vmem>>, vector<2x32xf32>
      %c0_13 = arith.constant 0 : index
      %c0_14 = arith.constant 0 : index
      %24 = vector.load %arg4[%c0_13, %c0_14] : memref<2x32xf32, #tpu.memory_space<vmem>>, vector<2x32xf32>
      %cst = arith.constant dense<0xFF800000> : vector<2xf32>
      %25 = vector.multi_reduction <maximumf>, %23, %cst [1] : vector<2x32xf32> to vector<2xf32>
      %26 = vector.shape_cast %25 : vector<2xf32> to vector<2x1xf32>
      %27 = vector.broadcast %26 : vector<2x1xf32> to vector<2x32xf32>
      %28 = arith.subf %23, %27 : vector<2x32xf32>
      %29 = math.exp %28 : vector<2x32xf32>
      %cst_15 = arith.constant dense<0.000000e+00> : vector<2xf32>
      %30 = vector.multi_reduction <add>, %29, %cst_15 [1] : vector<2x32xf32> to vector<2xf32>
      %31 = vector.shape_cast %30 : vector<2xf32> to vector<2x1xf32>
      %32 = math.log %31 : vector<2x1xf32>
      %33 = tpu.iota {dimensions = array<i32: 1>} : vector<2x32xi32>
      %c0_16 = arith.constant 0 : index
      %c0_17 = arith.constant 0 : index
      %34 = vector.load %arg2[%c0_16, %c0_17] : memref<2x1xi32, #tpu.memory_space<vmem>>, vector<2x1xi32>
      %35 = vector.broadcast %34 : vector<2x1xi32> to vector<2x32xi32>
      %36 = arith.cmpi eq, %33, %35 : vector<2x32xi32>
      %cst_18 = arith.constant 0.000000e+00 : f32
      %37 = vector.broadcast %cst_18 : f32 to vector<2x32xf32>
      %38 = arith.select %36, %28, %37 : vector<2x32xi1>, vector<2x32xf32>
      %cst_19 = arith.constant dense<0.000000e+00> : vector<2xf32>
      %39 = vector.multi_reduction <add>, %38, %cst_19 [1] : vector<2x32xf32> to vector<2xf32>
      %40 = vector.shape_cast %39 : vector<2xf32> to vector<2x1xf32>
      %41 = arith.subf %32, %40 : vector<2x1xf32>
      %42 = vector.shape_cast %41 : vector<2x1xf32> to vector<1x2x1xf32>
      %cst_20 = arith.constant dense<0.000000e+00> : vector<1xf32>
      %43 = vector.multi_reduction <add>, %42, %cst_20 [1, 2] : vector<1x2x1xf32> to vector<1xf32>
      %44 = vector.shape_cast %43 : vector<1xf32> to vector<1x1x1xf32>
      %45 = vector.extract %44[0, 0, 0] : f32 from vector<1x1x1xf32>
      %cst_21 = arith.constant 2.000000e+00 : f32
      %46 = arith.divf %45, %cst_21 : f32
      %47 = arith.subf %23, %24 : vector<2x32xf32>
      %48 = arith.mulf %47, %47 : vector<2x32xf32>
      %49 = vector.shape_cast %48 : vector<2x32xf32> to vector<1x2x32xf32>
      %cst_22 = arith.constant dense<0.000000e+00> : vector<1xf32>
      %50 = vector.multi_reduction <add>, %49, %cst_22 [1, 2] : vector<1x2x32xf32> to vector<1xf32>
      %51 = vector.shape_cast %50 : vector<1xf32> to vector<1x1x1xf32>
      %52 = vector.extract %51[0, 0, 0] : f32 from vector<1x1x1xf32>
      %cst_23 = arith.constant 1.562500e-02 : f32
      %53 = arith.mulf %52, %cst_23 : f32
      %cst_24 = arith.constant 5.000000e-01 : f32
      %54 = arith.mulf %cst_24, %53 : f32
      %55 = arith.addf %46, %54 : f32
      %c0_25 = arith.constant 0 : index
      %c0_26 = arith.constant 0 : index
      %c0_27 = arith.constant 0 : index
      %56 = vector.load %arg12[%c0_25, %c0_26, %c0_27] : memref<3x8x128xf32, #tpu.memory_space<vmem>>, vector<1x8x128xf32>
      %57 = vector.shape_cast %56 : vector<1x8x128xf32> to vector<8x128xf32>
      %58 = vector.shape_cast %57 : vector<8x128xf32> to vector<1x8x128xf32>
      %cst_28 = arith.constant dense<0.000000e+00> : vector<1xf32>
      %59 = vector.multi_reduction <add>, %58, %cst_28 [1, 2] : vector<1x8x128xf32> to vector<1xf32>
      %60 = vector.shape_cast %59 : vector<1xf32> to vector<1x1x1xf32>
      %61 = vector.extract %60[0, 0, 0] : f32 from vector<1x1x1xf32>
      %cst_29 = arith.constant 7.62939453E-6 : f32
      %62 = arith.mulf %61, %cst_29 : f32
      %cst_30 = arith.constant 0.000000e+00 : f32
      %63 = arith.addf %cst_30, %62 : f32
      %c1 = arith.constant 1 : index
      %c0_31 = arith.constant 0 : index
      %c0_32 = arith.constant 0 : index
      %64 = vector.load %arg12[%c1, %c0_31, %c0_32] : memref<3x8x128xf32, #tpu.memory_space<vmem>>, vector<1x8x128xf32>
      %65 = vector.shape_cast %64 : vector<1x8x128xf32> to vector<8x128xf32>
      %66 = vector.shape_cast %65 : vector<8x128xf32> to vector<1x8x128xf32>
      %cst_33 = arith.constant dense<0.000000e+00> : vector<1xf32>
      %67 = vector.multi_reduction <add>, %66, %cst_33 [1, 2] : vector<1x8x128xf32> to vector<1xf32>
      %68 = vector.shape_cast %67 : vector<1xf32> to vector<1x1x1xf32>
      %69 = vector.extract %68[0, 0, 0] : f32 from vector<1x1x1xf32>
      %cst_34 = arith.constant 2.44140625E-4 : f32
      %70 = arith.mulf %69, %cst_34 : f32
      %71 = arith.addf %63, %70 : f32
      %c2 = arith.constant 2 : index
      %c0_35 = arith.constant 0 : index
      %c0_36 = arith.constant 0 : index
      %72 = vector.load %arg12[%c2, %c0_35, %c0_36] : memref<3x8x128xf32, #tpu.memory_space<vmem>>, vector<1x8x128xf32>
      %73 = vector.shape_cast %72 : vector<1x8x128xf32> to vector<8x128xf32>
      %74 = vector.shape_cast %73 : vector<8x128xf32> to vector<1x8x128xf32>
      %cst_37 = arith.constant dense<0.000000e+00> : vector<1xf32>
      %75 = vector.multi_reduction <add>, %74, %cst_37 [1, 2] : vector<1x8x128xf32> to vector<1xf32>
      %76 = vector.shape_cast %75 : vector<1xf32> to vector<1x1x1xf32>
      %77 = vector.extract %76[0, 0, 0] : f32 from vector<1x1x1xf32>
      %cst_38 = arith.constant 0.00476190494 : f32
      %78 = arith.mulf %77, %cst_38 : f32
      %79 = arith.addf %71, %78 : f32
      %cst_39 = arith.constant 1.000000e-01 : f32
      %80 = arith.mulf %cst_39, %79 : f32
      %81 = arith.addf %55, %80 : f32
      %82 = vector.broadcast %81 : f32 to vector<1x8x128xf32>
      %c0_40 = arith.constant 0 : index
      %c0_41 = arith.constant 0 : index
      %c0_42 = arith.constant 0 : index
      %83 = vector.load %arg11[%c0_40, %c0_41, %c0_42] : memref<1x8x128xf32, #tpu.memory_space<vmem>>, vector<1x8x128xf32>
      tpu.vector_store %arg11[%c0_40, %c0_41, %c0_42], %82 {strides = array<i32>} : memref<1x8x128xf32, #tpu.memory_space<vmem>>, vector<1x8x128xf32>,
    } else {
    }
    %c0_i32_10 = arith.constant 0 : i32
    %19 = arith.cmpi sgt, %arg0, %c0_i32_10 : i32
    %20 = arith.andi %14, %19 : i1
    %21 = arith.extui %20 : i1 to i32
    %c0_i32_11 = arith.constant 0 : i32
    %22 = arith.cmpi ne, %21, %c0_i32_11 : i32
    scf.if %22 {
      %c0 = arith.constant 0 : index
      %c0_12 = arith.constant 0 : index
      %c0_13 = arith.constant 0 : index
      %23 = vector.load %arg12[%c0, %c0_12, %c0_13] : memref<3x8x128xf32, #tpu.memory_space<vmem>>, vector<1x8x128xf32>
      %24 = vector.shape_cast %23 : vector<1x8x128xf32> to vector<8x128xf32>
      %25 = vector.shape_cast %24 : vector<8x128xf32> to vector<1x8x128xf32>
      %cst = arith.constant dense<0.000000e+00> : vector<1xf32>
      %26 = vector.multi_reduction <add>, %25, %cst [1, 2] : vector<1x8x128xf32> to vector<1xf32>
      %27 = vector.shape_cast %26 : vector<1xf32> to vector<1x1x1xf32>
      %28 = vector.extract %27[0, 0, 0] : f32 from vector<1x1x1xf32>
      %cst_14 = arith.constant 7.62939453E-6 : f32
      %29 = arith.mulf %28, %cst_14 : f32
      %cst_15 = arith.constant 0.000000e+00 : f32
      %30 = arith.addf %cst_15, %29 : f32
      %c1 = arith.constant 1 : index
      %c0_16 = arith.constant 0 : index
      %c0_17 = arith.constant 0 : index
      %31 = vector.load %arg12[%c1, %c0_16, %c0_17] : memref<3x8x128xf32, #tpu.memory_space<vmem>>, vector<1x8x128xf32>
      %32 = vector.shape_cast %31 : vector<1x8x128xf32> to vector<8x128xf32>
      %33 = vector.shape_cast %32 : vector<8x128xf32> to vector<1x8x128xf32>
      %cst_18 = arith.constant dense<0.000000e+00> : vector<1xf32>
      %34 = vector.multi_reduction <add>, %33, %cst_18 [1, 2] : vector<1x8x128xf32> to vector<1xf32>
      %35 = vector.shape_cast %34 : vector<1xf32> to vector<1x1x1xf32>
      %36 = vector.extract %35[0, 0, 0] : f32 from vector<1x1x1xf32>
      %cst_19 = arith.constant 2.44140625E-4 : f32
      %37 = arith.mulf %36, %cst_19 : f32
      %38 = arith.addf %30, %37 : f32
      %c2 = arith.constant 2 : index
      %c0_20 = arith.constant 0 : index
      %c0_21 = arith.constant 0 : index
      %39 = vector.load %arg12[%c2, %c0_20, %c0_21] : memref<3x8x128xf32, #tpu.memory_space<vmem>>, vector<1x8x128xf32>
      %40 = vector.shape_cast %39 : vector<1x8x128xf32> to vector<8x128xf32>
      %41 = vector.shape_cast %40 : vector<8x128xf32> to vector<1x8x128xf32>
      %cst_22 = arith.constant dense<0.000000e+00> : vector<1xf32>
      %42 = vector.multi_reduction <add>, %41, %cst_22 [1, 2] : vector<1x8x128xf32> to vector<1xf32>
      %43 = vector.shape_cast %42 : vector<1xf32> to vector<1x1x1xf32>
      %44 = vector.extract %43[0, 0, 0] : f32 from vector<1x1x1xf32>
      %cst_23 = arith.constant 0.00476190494 : f32
      %45 = arith.mulf %44, %cst_23 : f32
      %46 = arith.addf %38, %45 : f32
      %cst_24 = arith.constant 1.000000e-01 : f32
      %47 = arith.mulf %cst_24, %46 : f32
      %48 = vector.broadcast %47 : f32 to vector<1x8x128xf32>
      %c0_25 = arith.constant 0 : index
      %c0_26 = arith.constant 0 : index
      %c0_27 = arith.constant 0 : index
      %49 = vector.load %arg11[%c0_25, %c0_26, %c0_27] : memref<1x8x128xf32, #tpu.memory_space<vmem>>, vector<1x8x128xf32>
      tpu.vector_store %arg11[%c0_25, %c0_26, %c0_27], %48 {strides = array<i32>} : memref<1x8x128xf32, #tpu.memory_space<vmem>>, vector<1x8x128xf32>,
    } else {
    }
    return
  }
  func.func @transform_0(%arg0: i32, %arg1: i32) -> (i32, i32) {
    %c0_i32 = arith.constant 0 : i32
    %c0_i32_0 = arith.constant 0 : i32
    %c0_i32_1 = arith.constant 0 : i32
    return %c0_i32, %c0_i32_0 : i32, i32
  }
  func.func @transform_1(%arg0: i32, %arg1: i32) -> (i32, i32) {
    %c0_i32 = arith.constant 0 : i32
    %c0_i32_0 = arith.constant 0 : i32
    %c0_i32_1 = arith.constant 0 : i32
    return %c0_i32, %c0_i32_0 : i32, i32
  }
  func.func @transform_2(%arg0: i32, %arg1: i32) -> (i32, i32) {
    %c0_i32 = arith.constant 0 : i32
    %c0_i32_0 = arith.constant 0 : i32
    %c0_i32_1 = arith.constant 0 : i32
    return %c0_i32, %c0_i32_0 : i32, i32
  }
  func.func @transform_3(%arg0: i32, %arg1: i32) -> (i32, i32, i32) {
    %c1_i32 = arith.constant 1 : i32
    %0 = arith.muli %arg0, %c1_i32 : i32
    %1 = arith.addi %0, %arg1 : i32
    %c0_i32 = arith.constant 0 : i32
    %2 = arith.minsi %1, %c0_i32 : i32
    %c0_i32_0 = arith.constant 0 : i32
    %c0_i32_1 = arith.constant 0 : i32
    %c0_i32_2 = arith.constant 0 : i32
    return %2, %c0_i32_0, %c0_i32_1 : i32, i32, i32
  }
  func.func @transform_4(%arg0: i32, %arg1: i32) -> (i32, i32, i32) {
    %c1_i32 = arith.constant 1 : i32
    %0 = arith.muli %arg0, %c1_i32 : i32
    %1 = arith.addi %0, %arg1 : i32
    %c0_i32 = arith.constant 0 : i32
    %2 = arith.minsi %1, %c0_i32 : i32
    %c0_i32_0 = arith.constant 0 : i32
    %c0_i32_1 = arith.constant 0 : i32
    %c0_i32_2 = arith.constant 0 : i32
    return %2, %c0_i32_0, %c0_i32_1 : i32, i32, i32
  }
  func.func @transform_5(%arg0: i32, %arg1: i32) -> (i32, i32, i32) {
    %c1_i32 = arith.constant 1 : i32
    %0 = arith.muli %arg0, %c1_i32 : i32
    %1 = arith.addi %0, %arg1 : i32
    %c0_i32 = arith.constant 0 : i32
    %2 = arith.minsi %1, %c0_i32 : i32
    %c0_i32_0 = arith.constant 0 : i32
    %c0_i32_1 = arith.constant 0 : i32
    %c0_i32_2 = arith.constant 0 : i32
    return %2, %c0_i32_0, %c0_i32_1 : i32, i32, i32
  }
  func.func @transform_6(%arg0: i32, %arg1: i32) -> (i32, i32, i32) {
    %c1_i32 = arith.constant 1 : i32
    %0 = arith.muli %arg0, %c1_i32 : i32
    %1 = arith.addi %0, %arg1 : i32
    %c0_i32 = arith.constant 0 : i32
    %2 = arith.minsi %1, %c0_i32 : i32
    %c0_i32_0 = arith.constant 0 : i32
    %c0_i32_1 = arith.constant 0 : i32
    %c0_i32_2 = arith.constant 0 : i32
    return %2, %c0_i32_0, %c0_i32_1 : i32, i32, i32
  }
  func.func @transform_7(%arg0: i32, %arg1: i32) -> (i32, i32, i32) {
    %c1_i32 = arith.constant 1 : i32
    %0 = arith.muli %arg0, %c1_i32 : i32
    %1 = arith.addi %0, %arg1 : i32
    %c0_i32 = arith.constant 0 : i32
    %2 = arith.minsi %1, %c0_i32 : i32
    %c0_i32_0 = arith.constant 0 : i32
    %c0_i32_1 = arith.constant 0 : i32
    %c0_i32_2 = arith.constant 0 : i32
    return %2, %c0_i32_0, %c0_i32_1 : i32, i32, i32
  }
  func.func @transform_8(%arg0: i32, %arg1: i32) -> (i32, i32, i32) {
    %c1_i32 = arith.constant 1 : i32
    %0 = arith.muli %arg0, %c1_i32 : i32
    %1 = arith.addi %0, %arg1 : i32
    %c0_i32 = arith.constant 0 : i32
    %2 = arith.minsi %1, %c0_i32 : i32
    %c0_i32_0 = arith.constant 0 : i32
    %c0_i32_1 = arith.constant 0 : i32
    %c0_i32_2 = arith.constant 0 : i32
    return %2, %c0_i32_0, %c0_i32_1 : i32, i32, i32
  }
  func.func @transform_9(%arg0: i32, %arg1: i32) -> (i32, i32, i32) {
    %c0_i32 = arith.constant 0 : i32
    %c0_i32_0 = arith.constant 0 : i32
    %c0_i32_1 = arith.constant 0 : i32
    return %arg0, %c0_i32, %c0_i32_0 : i32, i32, i32
  }
}

</mosaic_0001>

<bundles_post_ra>
// kernel: ensemble_knowledge_transfer_loss.1
= control target key start
LH: loop header
LB: loop body
LE: loop exit
PB: predicated region body
PF: predicated region fallthrough
CT: control target
= control target key end

     0   :  { %s1686_s30 = smov 0   ;;  %s1688_s10 = smov 0   ;;  %s2038_s0 = inlined_call_operand.vmem [shape: s32[2,1], index: 0, kind: input, shape index: {}]   ;;  %s2039_s1 = inlined_call_operand.vmem [shape: f32[2,32], index: 1, kind: input, shape index: {}]   ;;  %s2040_s2 = inlined_call_operand.vmem [shape: f32[2,32], index: 2, kind: input, shape index: {}]   ;;  %s2041_s3 = inlined_call_operand.vmem [shape: f32[1,1024,128], index: 3, kind: input, shape index: {}]   ;;  %s2042_s4 = inlined_call_operand.vmem [shape: f32[1,1024,128], index: 4, kind: input, shape index: {}]   ;;  %s2043_s5 = inlined_call_operand.vmem [shape: f32[1,32,128], index: 5, kind: input, shape index: {}]   ;;  %s2044_s6 = inlined_call_operand.vmem [shape: f32[1,32,128], index: 6, kind: input, shape index: {}]   ;;  %s2045_s7 = inlined_call_operand.vmem [shape: f32[1,8,128], index: 7, kind: input, shape index: {}]   ;;  %s2046_s8 = inlined_call_operand.vmem [shape: f32[1,8,128], index: 8, kind: input, shape index: {}]   ;;  %s2047_s9 = inlined_call_operand.vmem [shape: f32[2,8,128], index: 9, kind: output, shape index: {}]  }
   0x1   :  { %2048 = sst [smem:[#allocation4_spill]] %s2041_s3  ;;  %s1690_s11 = smov 0  }
   0x2 LB: > { %s31_s12 = sadd.s32 1, %s1628_s10  ;;  %p1522_p0 = scmp.ge.s32.totalorder %s1632_s11, 1  ;;  %s1632_s11 = sphi %s1690_s11, %s19_s11   ;;  %s1628_s10 = sphi %s1688_s10, %s2053_s10   ;;  %s1624_s30 = sphi %s1686_s30, %s2052_s30  }
   0x3   : > { %p33_p1 = scmp.ge.s32.totalorder %s31_s12, 2  ;;  %p419_p2 = scmp.lt.s32.totalorder %s1632_s11, 3 }
   0x5   : > { %s2055_s12 = smov (%p33_p1, %s31_s12), 0  ;;  %p420_p3 = pnand %p1522_p0, %p419_p2 }
   0x6   : > { %2049 = sst [smem:[#allocation3_spill]] %s2055_s12  ;;  %p496_p4 = scmp.lt.s32.totalorder (!%p420_p3), %s1624_s30, 0  ;;  %v1634_v0 = vmov (!%p420_p3), 0.0  }
   0x7   : > { %423 = sbr.rel (%p420_p3) target bundleno = 1040 (0x410), region = 56  ;;  %p559_p5 = scmp.lt.s32.totalorder (!%p420_p3), %s1624_s30, 1  ;;  %568 = vst [vmem:[#allocation2] sm:$0xff] (!%p420_p3), %v1634_v0  ;;  %569 = vst [vmem:[#allocation2 + $0x8] sm:$0xff] (!%p420_p3), %v1634_v0 }
   0x8   : > { %570 = vst [vmem:[#allocation2 + $0x10] sm:$0xff] (!%p420_p3), %v1634_v0  ;;  %s2050_s3 = sld [smem:[#allocation4_spill]] (!%p420_p3)  ;;  %p1552_p6 = scmp.ge.s32.totalorder (!%p420_p3), %s1624_s30, 1 }
   0xe   : > { %s497_s13 = scalar_select %p496_p4, %s1624_s30, 0 }
   0xf   : > { %s560_s14 = scalar_select %p559_p5, %s1624_s30, 1 }
  0x10   : > { %s2057_s13 = smov (!%p496_p4, %s497_s13), 0  ;;  %574 = sbr.rel (%p1552_p6) target bundleno = 282 (0x11a), region = 64 }
  0x11   : > { %s1551_s15 = sshll.u32 %s560_s14, 3  ;;  %s1557_s16 = sshll.u32 %s2057_s13, 10 }
  0x12   : > { %s1559_s17 = sshll.u32 %s2057_s13, 5  ;;  %s1713_s20 = scalar_lea.vmem %s2050_s3, %s1557_s16 }
  0x13   : > { %s1718_s23 = scalar_lea.vmem %s2042_s4, %s1557_s16  ;;  %s1723_s26 = scalar_lea.vmem %s2043_s5, %s1559_s17  ;;  %v575_v1 = vld [vmem:[%s1713_s20] sm:$0xff] (!%p1552_p6)  ;;  %v576_v2 = vld [vmem:[%s1713_s20 + $0x8] sm:$0xff] (!%p1552_p6)  ;;  %v577_v5 = vld [vmem:[%s1713_s20 + $0x10] sm:$0xff] (!%p1552_p6) }
  0x14   : > { %s1728_s29 = scalar_lea.vmem %s2044_s6, %s1559_s17  ;;  %s1546_s14 = sshll.u32 %s2057_s13, 3  ;;  %v703_v3 = vld [vmem:[%s1718_s23] sm:$0xff] (!%p1552_p6)  ;;  %v704_v4 = vld [vmem:[%s1718_s23 + $0x8] sm:$0xff] (!%p1552_p6)  ;;  %v705_v6 = vld [vmem:[%s1718_s23 + $0x10] sm:$0xff] (!%p1552_p6) }
  0x15   : > { %s1733_s19 = scalar_lea.vmem %s2047_s9, %s1551_s15  ;;  %s1738_s16 = scalar_lea.vmem %s2045_s7, %s1546_s14  ;;  %v831_v7 = vsub.f32 (!%p1552_p6), %v575_v1, %v703_v3  ;;  %v832_v8 = vsub.f32 (!%p1552_p6), %v576_v2, %v704_v4  ;;  %v578_v9 = vld [vmem:[%s1713_s20 + $0x18] sm:$0xff] (!%p1552_p6)  ;;  %v833_v11 = vsub.f32 (!%p1552_p6), %v577_v5, %v705_v6  ;;  %v579_v12 = vld [vmem:[%s1713_s20 + $0x20] sm:$0xff] (!%p1552_p6)  ;;  %v580_v17 = vld [vmem:[%s1713_s20 + $0x28] sm:$0xff] (!%p1552_p6) }
  0x16   : > { %s1743_s25 = scalar_lea.vmem %s2046_s8, %s1546_s14  ;;  %v706_v10 = vld [vmem:[%s1718_s23 + $0x18] sm:$0xff] (!%p1552_p6)  ;;  %v707_v13 = vld [vmem:[%s1718_s23 + $0x20] sm:$0xff] (!%p1552_p6)  ;;  %v708_v18 = vld [vmem:[%s1718_s23 + $0x28] sm:$0xff] (!%p1552_p6) }
  0x17   : > { %v834_v14 = vsub.f32 %v578_v9, %v706_v10  ;;  %v959_v15 = vmul.f32 %v831_v7, %v831_v7  ;;  %v960_v16 = vmul.f32 %v832_v8, %v832_v8  ;;  %v835_v19 = vsub.f32 %v579_v12, %v707_v13  ;;  %v581_v21 = vld [vmem:[%s1713_s20 + $0x30] sm:$0xff]  ;;  %v582_v26 = vld [vmem:[%s1713_s20 + $0x38] sm:$0xff]  ;;  %v583_v31 = vld [vmem:[%s1713_s20 + $0x40] sm:$0xff] }
  0x18   : > { %v961_v20 = vmul.f32 %v833_v11, %v833_v11  ;;  %v709_v22 = vld [vmem:[%s1718_s23 + $0x30] sm:$0xff]  ;;  %v836_v23 = vsub.f32 %v580_v17, %v708_v18  ;;  %v710_v27 = vld [vmem:[%s1718_s23 + $0x38] sm:$0xff]  ;;  %v711_v32 = vld [vmem:[%s1718_s23 + $0x40] sm:$0xff] }
  0x19   : > { %v962_v24 = vmul.f32 %v834_v14, %v834_v14  ;;  %v1088_v25 = vadd.f32 %v960_v16, %v959_v15  ;;  %v837_v28 = vsub.f32 %v581_v21, %v709_v22  ;;  %v963_v29 = vmul.f32 %v835_v19, %v835_v19  ;;  %v584_v36 = vld [vmem:[%s1713_s20 + $0x48] sm:$0xff]  ;;  %v585_v41 = vld [vmem:[%s1713_s20 + $0x50] sm:$0xff]  ;;  %v586_v46 = vld [vmem:[%s1713_s20 + $0x58] sm:$0xff] }
  0x1a   : > { %v838_v33 = vsub.f32 %v582_v26, %v710_v27  ;;  %v964_v34 = vmul.f32 %v836_v23, %v836_v23  ;;  %v712_v37 = vld [vmem:[%s1718_s23 + $0x48] sm:$0xff]  ;;  %v839_v38 = vsub.f32 %v583_v31, %v711_v32  ;;  %v713_v42 = vld [vmem:[%s1718_s23 + $0x50] sm:$0xff]  ;;  %v714_v47 = vld [vmem:[%s1718_s23 + $0x58] sm:$0xff] }
  0x1b   : > { %v1089_v30 = vadd.f32 %v1088_v25, %v961_v20  ;;  %v965_v39 = vmul.f32 %v837_v28, %v837_v28  ;;  %v840_v43 = vsub.f32 %v584_v36, %v712_v37  ;;  %v841_v48 = vsub.f32 %v585_v41, %v713_v42  ;;  %v587_v51 = vld [vmem:[%s1713_s20 + $0x60] sm:$0xff]  ;;  %v588_v56 = vld [vmem:[%s1713_s20 + $0x68] sm:$0xff]  ;;  %v589_v61 = vld [vmem:[%s1713_s20 + $0x70] sm:$0xff] }
  0x1c   : > { %v966_v44 = vmul.f32 %v838_v33, %v838_v33  ;;  %v967_v49 = vmul.f32 %v839_v38, %v839_v38  ;;  %v715_v52 = vld [vmem:[%s1718_s23 + $0x60] sm:$0xff]  ;;  %v842_v53 = vsub.f32 %v586_v46, %v714_v47  ;;  %v716_v57 = vld [vmem:[%s1718_s23 + $0x68] sm:$0xff]  ;;  %v717_v62 = vld [vmem:[%s1718_s23 + $0x70] sm:$0xff] }
  0x1d   : > { %v1090_v35 = vadd.f32 %v1089_v30, %v962_v24  ;;  %v968_v54 = vmul.f32 %v840_v43, %v840_v43  ;;  %v843_v58 = vsub.f32 %v587_v51, %v715_v52  ;;  %v969_v59 = vmul.f32 %v841_v48, %v841_v48  ;;  %v590_v2 = vld [vmem:[%s1713_s20 + $0x78] sm:$0xff]  ;;  %v591_v7 = vld [vmem:[%s1713_s20 + $0x80] sm:$0xff]  ;;  %v592_v12 = vld [vmem:[%s1713_s20 + $0x88] sm:$0xff] }
  0x1e   : > { %v844_v63 = vsub.f32 %v588_v56, %v716_v57  ;;  %v970_v0 = vmul.f32 %v842_v53, %v842_v53  ;;  %v718_v3 = vld [vmem:[%s1718_s23 + $0x78] sm:$0xff]  ;;  %v845_v4 = vsub.f32 %v589_v61, %v717_v62  ;;  %v719_v8 = vld [vmem:[%s1718_s23 + $0x80] sm:$0xff]  ;;  %v720_v13 = vld [vmem:[%s1718_s23 + $0x88] sm:$0xff] }
  0x1f   : > { %v1091_v40 = vadd.f32 %v1090_v35, %v963_v29  ;;  %v971_v5 = vmul.f32 %v843_v58, %v843_v58  ;;  %v846_v9 = vsub.f32 %v590_v2, %v718_v3  ;;  %v847_v14 = vsub.f32 %v591_v7, %v719_v8  ;;  %v593_v17 = vld [vmem:[%s1713_s20 + $0x90] sm:$0xff]  ;;  %v594_v22 = vld [vmem:[%s1713_s20 + $0x98] sm:$0xff]  ;;  %v595_v27 = vld [vmem:[%s1713_s20 + $0xa0] sm:$0xff] }
  0x20   : > { %v972_v10 = vmul.f32 %v844_v63, %v844_v63  ;;  %v973_v15 = vmul.f32 %v845_v4, %v845_v4  ;;  %v721_v18 = vld [vmem:[%s1718_s23 + $0x90] sm:$0xff]  ;;  %v848_v19 = vsub.f32 %v592_v12, %v720_v13  ;;  %v722_v23 = vld [vmem:[%s1718_s23 + $0x98] sm:$0xff]  ;;  %v723_v28 = vld [vmem:[%s1718_s23 + $0xa0] sm:$0xff] }
  0x21   : > { %v1092_v45 = vadd.f32 %v1091_v40, %v964_v34  ;;  %v974_v20 = vmul.f32 %v846_v9, %v846_v9  ;;  %v849_v24 = vsub.f32 %v593_v17, %v721_v18  ;;  %v975_v25 = vmul.f32 %v847_v14, %v847_v14  ;;  %v596_v32 = vld [vmem:[%s1713_s20 + $0xa8] sm:$0xff]  ;;  %v597_v37 = vld [vmem:[%s1713_s20 + $0xb0] sm:$0xff]  ;;  %v598_v42 = vld [vmem:[%s1713_s20 + $0xb8] sm:$0xff] }
  0x22   : > { %v850_v29 = vsub.f32 %v594_v22, %v722_v23  ;;  %v976_v30 = vmul.f32 %v848_v19, %v848_v19  ;;  %v724_v33 = vld [vmem:[%s1718_s23 + $0xa8] sm:$0xff]  ;;  %v851_v34 = vsub.f32 %v595_v27, %v723_v28  ;;  %v725_v38 = vld [vmem:[%s1718_s23 + $0xb0] sm:$0xff]  ;;  %v726_v43 = vld [vmem:[%s1718_s23 + $0xb8] sm:$0xff] }
  0x23   : > { %v1093_v50 = vadd.f32 %v1092_v45, %v965_v39  ;;  %v977_v35 = vmul.f32 %v849_v24, %v849_v24  ;;  %v852_v39 = vsub.f32 %v596_v32, %v724_v33  ;;  %v599_v47 = vld [vmem:[%s1713_s20 + $0xc0] sm:$0xff]  ;;  %v600_v52 = vld [vmem:[%s1713_s20 + $0xc8] sm:$0xff]  ;;  %v601_v57 = vld [vmem:[%s1713_s20 + $0xd0] sm:$0xff] }
  0x24   : > { %v978_v40 = vmul.f32 %v850_v29, %v850_v29  ;;  %v979_v45 = vmul.f32 %v851_v34, %v851_v34  ;;  %v727_v48 = vld [vmem:[%s1718_s23 + $0xc0] sm:$0xff]  ;;  %v728_v53 = vld [vmem:[%s1718_s23 + $0xc8] sm:$0xff]  ;;  %v729_v58 = vld [vmem:[%s1718_s23 + $0xd0] sm:$0xff] }
  0x25   : > { %v1094_v55 = vadd.f32 %v1093_v50, %v966_v44  ;;  %v853_v44 = vsub.f32 %v597_v37, %v725_v38  ;;  %v980_v50 = vmul.f32 %v852_v39, %v852_v39  ;;  %v602_v62 = vld [vmem:[%s1713_s20 + $0xd8] sm:$0xff]  ;;  %v603_v3 = vld [vmem:[%s1713_s20 + $0xe0] sm:$0xff]  ;;  %v604_v8 = vld [vmem:[%s1713_s20 + $0xe8] sm:$0xff] }
  0x26   : > { %v730_v63 = vld [vmem:[%s1718_s23 + $0xd8] sm:$0xff]  ;;  %v731_v4 = vld [vmem:[%s1718_s23 + $0xe0] sm:$0xff]  ;;  %v732_v9 = vld [vmem:[%s1718_s23 + $0xe8] sm:$0xff] }
  0x27   : > { %v1095_v60 = vadd.f32 %v1094_v55, %v967_v49  ;;  %v854_v49 = vsub.f32 %v598_v42, %v726_v43  ;;  %v981_v55 = vmul.f32 %v853_v44, %v853_v44  ;;  %v605_v13 = vld [vmem:[%s1713_s20 + $0xf0] sm:$0xff]  ;;  %v606_v18 = vld [vmem:[%s1713_s20 + $0xf8] sm:$0xff]  ;;  %v607_v23 = vld [vmem:[%s1713_s20 + $0x100] sm:$0xff] }
  0x28   : > { %v733_v14 = vld [vmem:[%s1718_s23 + $0xf0] sm:$0xff]  ;;  %v734_v19 = vld [vmem:[%s1718_s23 + $0xf8] sm:$0xff]  ;;  %v735_v24 = vld [vmem:[%s1718_s23 + $0x100] sm:$0xff] }
  0x29   : > { %v1096_v1 = vadd.f32 %v1095_v60, %v968_v54  ;;  %v855_v54 = vsub.f32 %v599_v47, %v727_v48  ;;  %v982_v60 = vmul.f32 %v854_v49, %v854_v49  ;;  %v608_v28 = vld [vmem:[%s1713_s20 + $0x108] sm:$0xff]  ;;  %v609_v33 = vld [vmem:[%s1713_s20 + $0x110] sm:$0xff]  ;;  %v610_v38 = vld [vmem:[%s1713_s20 + $0x118] sm:$0xff] }
  0x2a   : > { %v736_v29 = vld [vmem:[%s1718_s23 + $0x108] sm:$0xff]  ;;  %v737_v34 = vld [vmem:[%s1718_s23 + $0x110] sm:$0xff]  ;;  %v738_v39 = vld [vmem:[%s1718_s23 + $0x118] sm:$0xff] }
  0x2b   : > { %v1097_v6 = vadd.f32 %v1096_v1, %v969_v59  ;;  %v856_v59 = vsub.f32 %v600_v52, %v728_v53  ;;  %v983_v1 = vmul.f32 %v855_v54, %v855_v54  ;;  %v611_v43 = vld [vmem:[%s1713_s20 + $0x120] sm:$0xff]  ;;  %v612_v48 = vld [vmem:[%s1713_s20 + $0x128] sm:$0xff]  ;;  %v613_v53 = vld [vmem:[%s1713_s20 + $0x130] sm:$0xff] }
  0x2c   : > { %v739_v44 = vld [vmem:[%s1718_s23 + $0x120] sm:$0xff]  ;;  %v740_v49 = vld [vmem:[%s1718_s23 + $0x128] sm:$0xff]  ;;  %v741_v54 = vld [vmem:[%s1718_s23 + $0x130] sm:$0xff] }
  0x2d   : > { %v1098_v11 = vadd.f32 %v1097_v6, %v970_v0  ;;  %v857_v0 = vsub.f32 %v601_v57, %v729_v58  ;;  %v984_v6 = vmul.f32 %v856_v59, %v856_v59  ;;  %v614_v58 = vld [vmem:[%s1713_s20 + $0x138] sm:$0xff] }
  0x2e   : > { %v742_v59 = vld [vmem:[%s1718_s23 + $0x138] sm:$0xff] }
  0x2f   : > { %v1099_v16 = vadd.f32 %v1098_v11, %v971_v5  ;;  %v858_v5 = vsub.f32 %v602_v62, %v730_v63  ;;  %v985_v11 = vmul.f32 %v857_v0, %v857_v0  ;;  %v615_v63 = vld [vmem:[%s1713_s20 + $0x140] sm:$0xff] }
  0x30   : > { %v743_v0 = vld [vmem:[%s1718_s23 + $0x140] sm:$0xff] }
  0x31   : > { %v1100_v21 = vadd.f32 %v1099_v16, %v972_v10  ;;  %v859_v10 = vsub.f32 %v603_v3, %v731_v4  ;;  %v986_v16 = vmul.f32 %v858_v5, %v858_v5  ;;  %v616_v4 = vld [vmem:[%s1713_s20 + $0x148] sm:$0xff] }
  0x32   : > { %v744_v5 = vld [vmem:[%s1718_s23 + $0x148] sm:$0xff] }
  0x33   : > { %v1101_v26 = vadd.f32 %v1100_v21, %v973_v15  ;;  %v860_v15 = vsub.f32 %v604_v8, %v732_v9  ;;  %v987_v21 = vmul.f32 %v859_v10, %v859_v10  ;;  %v617_v9 = vld [vmem:[%s1713_s20 + $0x150] sm:$0xff] }
  0x34   : > { %v745_v10 = vld [vmem:[%s1718_s23 + $0x150] sm:$0xff] }
  0x35   : > { %v1102_v31 = vadd.f32 %v1101_v26, %v974_v20  ;;  %v861_v20 = vsub.f32 %v605_v13, %v733_v14  ;;  %v988_v26 = vmul.f32 %v860_v15, %v860_v15  ;;  %v618_v14 = vld [vmem:[%s1713_s20 + $0x158] sm:$0xff] }
  0x36   : > { %v746_v15 = vld [vmem:[%s1718_s23 + $0x158] sm:$0xff] }
  0x37   : > { %v1103_v36 = vadd.f32 %v1102_v31, %v975_v25  ;;  %v862_v25 = vsub.f32 %v606_v18, %v734_v19  ;;  %v989_v31 = vmul.f32 %v861_v20, %v861_v20  ;;  %v619_v19 = vld [vmem:[%s1713_s20 + $0x160] sm:$0xff] }
  0x38   : > { %v747_v20 = vld [vmem:[%s1718_s23 + $0x160] sm:$0xff] }
  0x39   : > { %v1104_v41 = vadd.f32 %v1103_v36, %v976_v30  ;;  %v863_v30 = vsub.f32 %v607_v23, %v735_v24  ;;  %v990_v36 = vmul.f32 %v862_v25, %v862_v25  ;;  %v620_v24 = vld [vmem:[%s1713_s20 + $0x168] sm:$0xff] }
  0x3a   : > { %v748_v25 = vld [vmem:[%s1718_s23 + $0x168] sm:$0xff] }
  0x3b   : > { %v1105_v46 = vadd.f32 %v1104_v41, %v977_v35  ;;  %v864_v35 = vsub.f32 %v608_v28, %v736_v29  ;;  %v991_v41 = vmul.f32 %v863_v30, %v863_v30  ;;  %v621_v29 = vld [vmem:[%s1713_s20 + $0x170] sm:$0xff] }
  0x3c   : > { %v749_v30 = vld [vmem:[%s1718_s23 + $0x170] sm:$0xff] }
  0x3d   : > { %v1106_v51 = vadd.f32 %v1105_v46, %v978_v40  ;;  %v865_v40 = vsub.f32 %v609_v33, %v737_v34  ;;  %v992_v46 = vmul.f32 %v864_v35, %v864_v35  ;;  %v622_v34 = vld [vmem:[%s1713_s20 + $0x178] sm:$0xff] }
  0x3e   : > { %v750_v35 = vld [vmem:[%s1718_s23 + $0x178] sm:$0xff] }
  0x3f   : > { %v1107_v56 = vadd.f32 %v1106_v51, %v979_v45  ;;  %v866_v45 = vsub.f32 %v610_v38, %v738_v39  ;;  %v993_v51 = vmul.f32 %v865_v40, %v865_v40  ;;  %v623_v39 = vld [vmem:[%s1713_s20 + $0x180] sm:$0xff] }
  0x40   : > { %v751_v40 = vld [vmem:[%s1718_s23 + $0x180] sm:$0xff] }
  0x41   : > { %v1108_v61 = vadd.f32 %v1107_v56, %v980_v50  ;;  %v867_v50 = vsub.f32 %v611_v43, %v739_v44  ;;  %v994_v56 = vmul.f32 %v866_v45, %v866_v45  ;;  %v624_v44 = vld [vmem:[%s1713_s20 + $0x188] sm:$0xff] }
  0x42   : > { %v752_v45 = vld [vmem:[%s1718_s23 + $0x188] sm:$0xff] }
  0x43   : > { %v1109_v2 = vadd.f32 %v1108_v61, %v981_v55  ;;  %v868_v55 = vsub.f32 %v612_v48, %v740_v49  ;;  %v995_v61 = vmul.f32 %v867_v50, %v867_v50  ;;  %v625_v49 = vld [vmem:[%s1713_s20 + $0x190] sm:$0xff] }
  0x44   : > { %v753_v50 = vld [vmem:[%s1718_s23 + $0x190] sm:$0xff] }
  0x45   : > { %v1110_v7 = vadd.f32 %v1109_v2, %v982_v60  ;;  %v869_v60 = vsub.f32 %v613_v53, %v741_v54  ;;  %v996_v2 = vmul.f32 %v868_v55, %v868_v55  ;;  %v626_v54 = vld [vmem:[%s1713_s20 + $0x198] sm:$0xff] }
  0x46   : > { %v754_v55 = vld [vmem:[%s1718_s23 + $0x198] sm:$0xff] }
  0x47   : > { %v1111_v12 = vadd.f32 %v1110_v7, %v983_v1  ;;  %v870_v1 = vsub.f32 %v614_v58, %v742_v59  ;;  %v997_v7 = vmul.f32 %v869_v60, %v869_v60  ;;  %v627_v59 = vld [vmem:[%s1713_s20 + $0x1a0] sm:$0xff] }
  0x48   : > { %v755_v60 = vld [vmem:[%s1718_s23 + $0x1a0] sm:$0xff] }
  0x49   : > { %v1112_v17 = vadd.f32 %v1111_v12, %v984_v6  ;;  %v871_v6 = vsub.f32 %v615_v63, %v743_v0  ;;  %v998_v12 = vmul.f32 %v870_v1, %v870_v1  ;;  %v628_v0 = vld [vmem:[%s1713_s20 + $0x1a8] sm:$0xff] }
  0x4a   : > { %v756_v1 = vld [vmem:[%s1718_s23 + $0x1a8] sm:$0xff] }
  0x4b   : > { %v1113_v22 = vadd.f32 %v1112_v17, %v985_v11  ;;  %v872_v11 = vsub.f32 %v616_v4, %v744_v5  ;;  %v999_v17 = vmul.f32 %v871_v6, %v871_v6  ;;  %v629_v5 = vld [vmem:[%s1713_s20 + $0x1b0] sm:$0xff] }
  0x4c   : > { %v757_v6 = vld [vmem:[%s1718_s23 + $0x1b0] sm:$0xff] }
  0x4d   : > { %v1114_v27 = vadd.f32 %v1113_v22, %v986_v16  ;;  %v873_v16 = vsub.f32 %v617_v9, %v745_v10  ;;  %v1000_v22 = vmul.f32 %v872_v11, %v872_v11  ;;  %v630_v10 = vld [vmem:[%s1713_s20 + $0x1b8] sm:$0xff] }
  0x4e   : > { %v758_v11 = vld [vmem:[%s1718_s23 + $0x1b8] sm:$0xff] }
  0x4f   : > { %v1115_v32 = vadd.f32 %v1114_v27, %v987_v21  ;;  %v874_v21 = vsub.f32 %v618_v14, %v746_v15  ;;  %v1001_v27 = vmul.f32 %v873_v16, %v873_v16  ;;  %v631_v15 = vld [vmem:[%s1713_s20 + $0x1c0] sm:$0xff] }
  0x50   : > { %v759_v16 = vld [vmem:[%s1718_s23 + $0x1c0] sm:$0xff] }
  0x51   : > { %v1116_v37 = vadd.f32 %v1115_v32, %v988_v26  ;;  %v875_v26 = vsub.f32 %v619_v19, %v747_v20  ;;  %v1002_v32 = vmul.f32 %v874_v21, %v874_v21  ;;  %v632_v20 = vld [vmem:[%s1713_s20 + $0x1c8] sm:$0xff] }
  0x52   : > { %v760_v21 = vld [vmem:[%s1718_s23 + $0x1c8] sm:$0xff] }
  0x53   : > { %v1117_v42 = vadd.f32 %v1116_v37, %v989_v31  ;;  %v876_v31 = vsub.f32 %v620_v24, %v748_v25  ;;  %v1003_v37 = vmul.f32 %v875_v26, %v875_v26  ;;  %v633_v25 = vld [vmem:[%s1713_s20 + $0x1d0] sm:$0xff] }
  0x54   : > { %v761_v26 = vld [vmem:[%s1718_s23 + $0x1d0] sm:$0xff] }
  0x55   : > { %v1118_v47 = vadd.f32 %v1117_v42, %v990_v36  ;;  %v877_v36 = vsub.f32 %v621_v29, %v749_v30  ;;  %v1004_v42 = vmul.f32 %v876_v31, %v876_v31  ;;  %v634_v30 = vld [vmem:[%s1713_s20 + $0x1d8] sm:$0xff] }
  0x56   : > { %v762_v31 = vld [vmem:[%s1718_s23 + $0x1d8] sm:$0xff] }
  0x57   : > { %v1119_v52 = vadd.f32 %v1118_v47, %v991_v41  ;;  %v878_v41 = vsub.f32 %v622_v34, %v750_v35  ;;  %v1005_v47 = vmul.f32 %v877_v36, %v877_v36  ;;  %v635_v35 = vld [vmem:[%s1713_s20 + $0x1e0] sm:$0xff] }
  0x58   : > { %v763_v36 = vld [vmem:[%s1718_s23 + $0x1e0] sm:$0xff] }
  0x59   : > { %v1120_v57 = vadd.f32 %v1119_v52, %v992_v46  ;;  %v879_v46 = vsub.f32 %v623_v39, %v751_v40  ;;  %v1006_v52 = vmul.f32 %v878_v41, %v878_v41  ;;  %v636_v40 = vld [vmem:[%s1713_s20 + $0x1e8] sm:$0xff] }
  0x5a   : > { %v764_v41 = vld [vmem:[%s1718_s23 + $0x1e8] sm:$0xff] }
  0x5b   : > { %v1121_v62 = vadd.f32 %v1120_v57, %v993_v51  ;;  %v880_v51 = vsub.f32 %v624_v44, %v752_v45  ;;  %v1007_v57 = vmul.f32 %v879_v46, %v879_v46  ;;  %v637_v45 = vld [vmem:[%s1713_s20 + $0x1f0] sm:$0xff] }
  0x5c   : > { %v765_v46 = vld [vmem:[%s1718_s23 + $0x1f0] sm:$0xff] }
  0x5d   : > { %v1122_v3 = vadd.f32 %v1121_v62, %v994_v56  ;;  %v881_v56 = vsub.f32 %v625_v49, %v753_v50  ;;  %v1008_v62 = vmul.f32 %v880_v51, %v880_v51  ;;  %v638_v50 = vld [vmem:[%s1713_s20 + $0x1f8] sm:$0xff] }
  0x5e   : > { %v766_v51 = vld [vmem:[%s1718_s23 + $0x1f8] sm:$0xff] }
  0x5f   : > { %v1123_v8 = vadd.f32 %v1122_v3, %v995_v61  ;;  %v882_v61 = vsub.f32 %v626_v54, %v754_v55  ;;  %v1009_v3 = vmul.f32 %v881_v56, %v881_v56  ;;  %v893_v54 = vsub.f32 %v637_v45, %v765_v46 }
  0x61   : > { %v1124_v13 = vadd.f32 %v1123_v8, %v996_v2  ;;  %v883_v2 = vsub.f32 %v627_v59, %v755_v60  ;;  %v1010_v8 = vmul.f32 %v882_v61, %v882_v61  ;;  %v1221_v59 = vld [vmem:[%s1728_s29] sm:$0xff]  ;;  %v640_v60 = vld [vmem:[%s1713_s20 + $0x208] sm:$0xff] }
  0x62   : > { %v768_v61 = vld [vmem:[%s1718_s23 + $0x208] sm:$0xff] }
  0x63   : > { %v1125_v18 = vadd.f32 %v1124_v13, %v997_v7  ;;  %v884_v7 = vsub.f32 %v628_v0, %v756_v1  ;;  %v1011_v13 = vmul.f32 %v883_v2, %v883_v2  ;;  %v1222_v1 = vld [vmem:[%s1728_s29 + $0x8] sm:$0xff] }
  0x65   : > { %v1126_v23 = vadd.f32 %v1125_v18, %v998_v12  ;;  %v885_v12 = vsub.f32 %v629_v5, %v757_v6  ;;  %v1012_v18 = vmul.f32 %v884_v7, %v884_v7  ;;  %v1223_v5 = vld [vmem:[%s1728_s29 + $0x10] sm:$0xff] }
  0x66   : > { %v641_v7 = vld [vmem:[%s1713_s20 + $0x210] sm:$0xff] }
  0x67   : > { %v1127_v28 = vadd.f32 %v1126_v23, %v999_v17  ;;  %v886_v17 = vsub.f32 %v630_v10, %v758_v11  ;;  %v1013_v23 = vmul.f32 %v885_v12, %v885_v12 }
  0x69   : > { %v1128_v33 = vadd.f32 %v1127_v28, %v1000_v22  ;;  %v887_v22 = vsub.f32 %v631_v15, %v759_v16  ;;  %v1014_v28 = vmul.f32 %v886_v17, %v886_v17  ;;  %v1224_v15 = vld [vmem:[%s1728_s29 + $0x18] sm:$0xff] }
  0x6a   : > { %v642_v17 = vld [vmem:[%s1713_s20 + $0x218] sm:$0xff] }
  0x6b   : > { %v1129_v38 = vadd.f32 %v1128_v33, %v1001_v27  ;;  %v888_v27 = vsub.f32 %v632_v20, %v760_v21  ;;  %v1015_v33 = vmul.f32 %v887_v22, %v887_v22  ;;  %v770_v22 = vld [vmem:[%s1718_s23 + $0x218] sm:$0xff] }
  0x6d   : > { %v1130_v43 = vadd.f32 %v1129_v38, %v1002_v32  ;;  %v889_v32 = vsub.f32 %v633_v25, %v761_v26  ;;  %v1016_v38 = vmul.f32 %v888_v27, %v888_v27  ;;  %v1240_v25 = vld [vmem:[%s1738_s16] sm:$0xff] }
  0x6e   : > { %v1241_v26 = vld [vmem:[%s1743_s25] sm:$0xff] }
  0x6f   : > { %v1131_v48 = vadd.f32 %v1130_v43, %v1003_v37  ;;  %v890_v37 = vsub.f32 %v634_v30, %v762_v31  ;;  %v1017_v43 = vmul.f32 %v889_v32, %v889_v32  ;;  %v1242_v30 = vsub.f32 %v1240_v25, %v1241_v26  ;;  %v643_v31 = vld [vmem:[%s1713_s20 + $0x220] sm:$0xff]  ;;  %v781_v25 = vld [vmem:[%s1718_s23 + $0x270] sm:$0xff] }
  0x70   : > { %v771_v32 = vld [vmem:[%s1718_s23 + $0x220] sm:$0xff] }
  0x71   : > { %v1132_v53 = vadd.f32 %v1131_v48, %v1004_v42  ;;  %v891_v42 = vsub.f32 %v635_v35, %v763_v36  ;;  %v1018_v48 = vmul.f32 %v890_v37, %v890_v37  ;;  %v898_v35 = vsub.f32 %v642_v17, %v770_v22 }
  0x73   : > { %v1133_v58 = vadd.f32 %v1132_v53, %v1005_v47  ;;  %v892_v47 = vsub.f32 %v636_v40, %v764_v41  ;;  %v767_v53 = vld [vmem:[%s1718_s23 + $0x200] sm:$0xff]  ;;  %v1019_v55 = vmul.f32 %v891_v42, %v891_v42  ;;  %v1234_v40 = vld [vmem:[#allocation2 + $0x8] sm:$0xff]  ;;  %v1245_v42 = vld [vmem:[#allocation2 + $0x10] sm:$0xff] }
  0x75   : > { %v1134_v63 = vadd.f32 %v1133_v58, %v1006_v52  ;;  %v639_v52 = vld [vmem:[%s1713_s20 + $0x200] sm:$0xff]  ;;  %v1218_v58 = vld [vmem:[%s1723_s26 + $0x8] sm:$0xff] }
  0x76   : > { %v1226_v6 = vsub.f32 %v1218_v58, %v1222_v1  ;;  %v647_v58 = vld [vmem:[%s1713_s20 + $0x240] sm:$0xff] }
  0x77   : > { %v1135_v4 = vadd.f32 %v1134_v63, %v1007_v57  ;;  %v1217_v57 = vld [vmem:[%s1723_s26] sm:$0xff]  ;;  %v1020_v63 = vmul.f32 %v892_v47, %v892_v47  ;;  %v645_v47 = vld [vmem:[%s1713_s20 + $0x230] sm:$0xff] }
  0x78   : > { %v1225_v2 = vsub.f32 %v1217_v57, %v1221_v59  ;;  %v1230_v16 = vmul.f32 %v1226_v6, %v1226_v6  ;;  %v775_v59 = vld [vmem:[%s1718_s23 + $0x240] sm:$0xff] }
  0x79   : > { %v1136_v9 = vadd.f32 %v1135_v4, %v1008_v62  ;;  %v894_v62 = vsub.f32 %v638_v50, %v766_v51  ;;  %v1219_v4 = vld [vmem:[%s1723_s26 + $0x10] sm:$0xff]  ;;  %v1026_v51 = vmul.f32 %v898_v35, %v898_v35  ;;  %v903_v1 = vsub.f32 %v647_v58, %v775_v59  ;;  %v783_v35 = vld [vmem:[%s1718_s23 + $0x280] sm:$0xff]  ;;  %v660_v59 = vld [vmem:[%s1713_s20 + $0x2a8] sm:$0xff] }
  0x7a   : > { %v1227_v11 = vsub.f32 %v1219_v4, %v1223_v5  ;;  %v1229_v12 = vmul.f32 %v1225_v2, %v1225_v2  ;;  %v649_v4 = vld [vmem:[%s1713_s20 + $0x250] sm:$0xff] }
  0x7b   : > { %v1137_v14 = vadd.f32 %v1136_v9, %v1009_v3  ;;  %v895_v3 = vsub.f32 %v639_v52, %v767_v53  ;;  %v1021_v9 = vmul.f32 %v893_v54, %v893_v54  ;;  %v646_v53 = vld [vmem:[%s1713_s20 + $0x238] sm:$0xff]  ;;  %v777_v5 = vld [vmem:[%s1718_s23 + $0x250] sm:$0xff] }
  0x7c   : > { %v1231_v21 = vmul.f32 %v1227_v11, %v1227_v11  ;;  %v774_v54 = vld [vmem:[%s1718_s23 + $0x238] sm:$0xff]  ;;  %v905_v11 = vsub.f32 %v649_v4, %v777_v5 }
  0x7d   : > { %v1138_v19 = vadd.f32 %v1137_v14, %v1010_v8  ;;  %v769_v8 = vld [vmem:[%s1718_s23 + $0x210] sm:$0xff]  ;;  %v1220_v14 = vld [vmem:[%s1723_s26 + $0x18] sm:$0xff]  ;;  %v1023_v27 = vmul.f32 %v895_v3, %v895_v3 }
  0x7e   : > { %v1228_v20 = vsub.f32 %v1220_v14, %v1224_v15  ;;  %v651_v14 = vld [vmem:[%s1713_s20 + $0x260] sm:$0xff]  ;;  %v1033_v22 = vmul.f32 %v905_v11, %v905_v11  ;;  %v662_v5 = vld [vmem:[%s1713_s20 + $0x2b8] sm:$0xff] }
  0x7f   : > { %v1139_v24 = vadd.f32 %v1138_v19, %v1011_v13  ;;  %v896_v13 = vsub.f32 %v640_v60, %v768_v61  ;;  %v902_v60 = vsub.f32 %v646_v53, %v774_v54  ;;  %v779_v15 = vld [vmem:[%s1718_s23 + $0x260] sm:$0xff] }
  0x80   : > { %v659_v54 = vld [vmem:[%s1713_s20 + $0x2a0] sm:$0xff] }
  0x81   : > { %v1140_v29 = vadd.f32 %v1139_v24, %v1012_v18  ;;  %v1022_v18 = vmul.f32 %v894_v62, %v894_v62  ;;  %v1235_v24 = vadd.f32 %v1230_v16, %v1229_v12  ;;  %v1024_v36 = vmul.f32 %v896_v13, %v896_v13  ;;  %v791_v11 = vld [vmem:[%s1718_s23 + $0x2c0] sm:$0xff] }
  0x82   : > { %v1031_v12 = vmul.f32 %v903_v1, %v903_v1  ;;  %v789_v1 = vld [vmem:[%s1718_s23 + $0x2b0] sm:$0xff] }
  0x83   : > { %v1141_v34 = vadd.f32 %v1140_v29, %v1013_v23  ;;  %v897_v23 = vsub.f32 %v641_v7, %v769_v8  ;;  %v1232_v29 = vmul.f32 %v1228_v20, %v1228_v20  ;;  %v1030_v7 = vmul.f32 %v902_v60, %v902_v60  ;;  %v780_v20 = vld [vmem:[%s1718_s23 + $0x268] sm:$0xff] }
  0x84   : > { %v788_v60 = vld [vmem:[%s1718_s23 + $0x2a8] sm:$0xff] }
  0x85   : > { %v1142_v39 = vadd.f32 %v1141_v34, %v1014_v28  ;;  %v644_v34 = vld [vmem:[%s1713_s20 + $0x228] sm:$0xff] }
  0x87   : > { %v1143_v44 = vadd.f32 %v1142_v39, %v1015_v33  ;;  %v1236_v33 = vadd.f32 %v1235_v24, %v1231_v21  ;;  %v772_v39 = vld [vmem:[%s1718_s23 + $0x228] sm:$0xff]  ;;  %v907_v21 = vsub.f32 %v651_v14, %v779_v15  ;;  %v653_v24 = vld [vmem:[%s1713_s20 + $0x270] sm:$0xff] }
  0x88   : > { %v900_v50 = vsub.f32 %v644_v34, %v772_v39  ;;  %v655_v34 = vld [vmem:[%s1713_s20 + $0x280] sm:$0xff]  ;;  %v656_v39 = vld [vmem:[%s1713_s20 + $0x288] sm:$0xff] }
  0x89   : > { %v1144_v49 = vadd.f32 %v1143_v44, %v1016_v38  ;;  %v1243_v38 = vmul.f32 %v1242_v30, %v1242_v30  ;;  %v1237_v41 = vadd.f32 %v1236_v33, %v1232_v29  ;;  %v1025_v44 = vmul.f32 %v897_v23, %v897_v23  ;;  %v654_v29 = vld [vmem:[%s1713_s20 + $0x278] sm:$0xff]  ;;  %v664_v15 = vld [vmem:[%s1713_s20 + $0x2c8] sm:$0xff] }
  0x8a   : > { %v1028_v61 = vmul.f32 %v900_v50, %v900_v50  ;;  %v782_v30 = vld [vmem:[%s1718_s23 + $0x278] sm:$0xff] }
  0x8b   : > { %v1145_v56 = vadd.f32 %v1144_v49, %v1017_v43  ;;  %v899_v43 = vsub.f32 %v643_v31, %v771_v32  ;;  %v1247_v46 = vadd.f32 %v1245_v42, %v1243_v38  ;;  %v1238_v49 = vadd.f32 %v1237_v41, %v1234_v40  ;;  %v784_v40 = vld [vmem:[%s1718_s23 + $0x288] sm:$0xff]  ;;  %v786_v50 = vld [vmem:[%s1718_s23 + $0x298] sm:$0xff] }
  0x8c   : > { %v909_v31 = vsub.f32 %v653_v24, %v781_v25  ;;  %v1035_v32 = vmul.f32 %v907_v21, %v907_v21  ;;  %v911_v41 = vsub.f32 %v655_v34, %v783_v35  ;;  %v793_v21 = vld [vmem:[%s1718_s23 + $0x2d0] sm:$0xff]  ;;  %v666_v25 = vld [vmem:[%s1713_s20 + $0x2d8] sm:$0xff]  ;;  %v668_v35 = vld [vmem:[%s1713_s20 + $0x2e8] sm:$0xff] }
  0x8d   : > { %v1146_v0 = vadd.f32 %v1145_v56, %v1018_v48  ;;  %v773_v48 = vld [vmem:[%s1718_s23 + $0x230] sm:$0xff]  ;;  %1248 = vst [vmem:[#allocation2 + $0x10] sm:$0xff] %v1247_v46  ;;  %1239 = vst [vmem:[#allocation2 + $0x8] sm:$0xff] %v1238_v49  ;;  %v1027_v56 = vmul.f32 %v899_v43, %v899_v43  ;;  %v912_v46 = vsub.f32 %v656_v39, %v784_v40  ;;  %v658_v49 = vld [vmem:[%s1713_s20 + $0x298] sm:$0xff] }
  0x8e   : > { %v1037_v42 = vmul.f32 %v909_v31, %v909_v31  ;;  %v795_v31 = vld [vmem:[%s1718_s23 + $0x2e0] sm:$0xff]  ;;  %v669_v40 = vld [vmem:[%s1713_s20 + $0x2f0] sm:$0xff] }
  0x8f   : > { %v1147_v10 = vadd.f32 %v1146_v0, %v1019_v55  ;;  %v901_v55 = vsub.f32 %v645_v47, %v773_v48  ;;  %v776_v0 = vld [vmem:[%s1718_s23 + $0x248] sm:$0xff] }
  0x91   : > { %v1148_v19 = vadd.f32 %v1147_v10, %v1020_v63  ;;  %v648_v63 = vld [vmem:[%s1713_s20 + $0x248] sm:$0xff]  ;;  %v1029_v2 = vmul.f32 %v901_v55, %v901_v55  ;;  %v778_v10 = vld [vmem:[%s1718_s23 + $0x258] sm:$0xff]  ;;  %v787_v55 = vld [vmem:[%s1718_s23 + $0x2a0] sm:$0xff] }
  0x92   : > { %v904_v6 = vsub.f32 %v648_v63, %v776_v0  ;;  %v661_v0 = vld [vmem:[%s1713_s20 + $0x2b0] sm:$0xff] }
  0x93   : > { %v1149_v28 = vadd.f32 %v1148_v19, %v1021_v9  ;;  %v650_v9 = vld [vmem:[%s1713_s20 + $0x258] sm:$0xff]  ;;  %v652_v19 = vld [vmem:[%s1713_s20 + $0x268] sm:$0xff] }
  0x94   : > { %v906_v16 = vsub.f32 %v650_v9, %v778_v10  ;;  %v1032_v17 = vmul.f32 %v904_v6, %v904_v6  ;;  %v908_v26 = vsub.f32 %v652_v19, %v780_v20  ;;  %v790_v6 = vld [vmem:[%s1718_s23 + $0x2b8] sm:$0xff]  ;;  %v663_v10 = vld [vmem:[%s1713_s20 + $0x2c0] sm:$0xff]  ;;  %v665_v20 = vld [vmem:[%s1713_s20 + $0x2d0] sm:$0xff] }
  0x95   : > { %v1150_v37 = vadd.f32 %v1149_v28, %v1022_v18 }
  0x97   : > { %v1151_v45 = vadd.f32 %v1150_v37, %v1023_v27  ;;  %v1034_v27 = vmul.f32 %v906_v16, %v906_v16  ;;  %v1036_v37 = vmul.f32 %v908_v26, %v908_v26  ;;  %v792_v16 = vld [vmem:[%s1718_s23 + $0x2c8] sm:$0xff]  ;;  %v794_v26 = vld [vmem:[%s1718_s23 + $0x2d8] sm:$0xff] }
  0x99   : > { %v1152_v52 = vadd.f32 %v1151_v45, %v1024_v36  ;;  %v910_v36 = vsub.f32 %v654_v29, %v782_v30  ;;  %v785_v45 = vld [vmem:[%s1718_s23 + $0x290] sm:$0xff]  ;;  %v667_v30 = vld [vmem:[%s1713_s20 + $0x2e0] sm:$0xff] }
  0x9b   : > { %v1153_v57 = vadd.f32 %v1152_v52, %v1025_v44  ;;  %v657_v44 = vld [vmem:[%s1713_s20 + $0x290] sm:$0xff]  ;;  %v1038_v47 = vmul.f32 %v910_v36, %v910_v36  ;;  %v1039_v52 = vmul.f32 %v911_v41, %v911_v41  ;;  %v796_v36 = vld [vmem:[%s1718_s23 + $0x2e8] sm:$0xff] }
  0x9c   : > { %v797_v41 = vld [vmem:[%s1718_s23 + $0x2f0] sm:$0xff] }
  0x9d   : > { %v1154_v62 = vadd.f32 %v1153_v57, %v1026_v51  ;;  %v913_v51 = vsub.f32 %v657_v44, %v785_v45  ;;  %v1040_v57 = vmul.f32 %v912_v46, %v912_v46  ;;  %v670_v45 = vld [vmem:[%s1713_s20 + $0x2f8] sm:$0xff] }
  0x9e   : > { %v798_v46 = vld [vmem:[%s1718_s23 + $0x2f8] sm:$0xff] }
  0x9f   : > { %v1155_v3 = vadd.f32 %v1154_v62, %v1027_v56  ;;  %v914_v56 = vsub.f32 %v658_v49, %v786_v50  ;;  %v1041_v62 = vmul.f32 %v913_v51, %v913_v51  ;;  %v671_v50 = vld [vmem:[%s1713_s20 + $0x300] sm:$0xff] }
  0xa0   : > { %v799_v51 = vld [vmem:[%s1718_s23 + $0x300] sm:$0xff] }
  0xa1   : > { %v1156_v8 = vadd.f32 %v1155_v3, %v1028_v61  ;;  %v915_v61 = vsub.f32 %v659_v54, %v787_v55  ;;  %v1042_v3 = vmul.f32 %v914_v56, %v914_v56  ;;  %v672_v55 = vld [vmem:[%s1713_s20 + $0x308] sm:$0xff] }
  0xa2   : > { %v800_v56 = vld [vmem:[%s1718_s23 + $0x308] sm:$0xff] }
  0xa3   : > { %v1157_v13 = vadd.f32 %v1156_v8, %v1029_v2  ;;  %v916_v2 = vsub.f32 %v660_v59, %v788_v60  ;;  %v1043_v8 = vmul.f32 %v915_v61, %v915_v61  ;;  %v673_v60 = vld [vmem:[%s1713_s20 + $0x310] sm:$0xff] }
  0xa4   : > { %v801_v61 = vld [vmem:[%s1718_s23 + $0x310] sm:$0xff] }
  0xa5   : > { %v1158_v18 = vadd.f32 %v1157_v13, %v1030_v7  ;;  %v917_v7 = vsub.f32 %v661_v0, %v789_v1  ;;  %v1044_v13 = vmul.f32 %v916_v2, %v916_v2  ;;  %v674_v1 = vld [vmem:[%s1713_s20 + $0x318] sm:$0xff] }
  0xa6   : > { %v802_v2 = vld [vmem:[%s1718_s23 + $0x318] sm:$0xff] }
  0xa7   : > { %v1159_v23 = vadd.f32 %v1158_v18, %v1031_v12  ;;  %v918_v12 = vsub.f32 %v662_v5, %v790_v6  ;;  %v1045_v18 = vmul.f32 %v917_v7, %v917_v7  ;;  %v675_v6 = vld [vmem:[%s1713_s20 + $0x320] sm:$0xff] }
  0xa8   : > { %v803_v7 = vld [vmem:[%s1718_s23 + $0x320] sm:$0xff] }
  0xa9   : > { %v1160_v28 = vadd.f32 %v1159_v23, %v1032_v17  ;;  %v919_v17 = vsub.f32 %v663_v10, %v791_v11  ;;  %v1046_v23 = vmul.f32 %v918_v12, %v918_v12  ;;  %v676_v11 = vld [vmem:[%s1713_s20 + $0x328] sm:$0xff] }
  0xaa   : > { %v804_v12 = vld [vmem:[%s1718_s23 + $0x328] sm:$0xff] }
  0xab   : > { %v1161_v33 = vadd.f32 %v1160_v28, %v1033_v22  ;;  %v920_v22 = vsub.f32 %v664_v15, %v792_v16  ;;  %v1047_v28 = vmul.f32 %v919_v17, %v919_v17  ;;  %v677_v16 = vld [vmem:[%s1713_s20 + $0x330] sm:$0xff] }
  0xac   : > { %v805_v17 = vld [vmem:[%s1718_s23 + $0x330] sm:$0xff] }
  0xad   : > { %v1162_v38 = vadd.f32 %v1161_v33, %v1034_v27  ;;  %v921_v27 = vsub.f32 %v665_v20, %v793_v21  ;;  %v1048_v33 = vmul.f32 %v920_v22, %v920_v22  ;;  %v678_v21 = vld [vmem:[%s1713_s20 + $0x338] sm:$0xff] }
  0xae   : > { %v806_v22 = vld [vmem:[%s1718_s23 + $0x338] sm:$0xff] }
  0xaf   : > { %v1163_v43 = vadd.f32 %v1162_v38, %v1035_v32  ;;  %v922_v32 = vsub.f32 %v666_v25, %v794_v26  ;;  %v1049_v38 = vmul.f32 %v921_v27, %v921_v27  ;;  %v679_v26 = vld [vmem:[%s1713_s20 + $0x340] sm:$0xff] }
  0xb0   : > { %v807_v27 = vld [vmem:[%s1718_s23 + $0x340] sm:$0xff] }
  0xb1   : > { %v1164_v48 = vadd.f32 %v1163_v43, %v1036_v37  ;;  %v923_v37 = vsub.f32 %v667_v30, %v795_v31  ;;  %v1050_v43 = vmul.f32 %v922_v32, %v922_v32  ;;  %v680_v31 = vld [vmem:[%s1713_s20 + $0x348] sm:$0xff] }
  0xb2   : > { %v808_v32 = vld [vmem:[%s1718_s23 + $0x348] sm:$0xff] }
  0xb3   : > { %v1165_v53 = vadd.f32 %v1164_v48, %v1037_v42  ;;  %v924_v42 = vsub.f32 %v668_v35, %v796_v36  ;;  %v1051_v48 = vmul.f32 %v923_v37, %v923_v37  ;;  %v681_v36 = vld [vmem:[%s1713_s20 + $0x350] sm:$0xff] }
  0xb4   : > { %v809_v37 = vld [vmem:[%s1718_s23 + $0x350] sm:$0xff] }
  0xb5   : > { %v1166_v58 = vadd.f32 %v1165_v53, %v1038_v47  ;;  %v925_v47 = vsub.f32 %v669_v40, %v797_v41  ;;  %v1052_v53 = vmul.f32 %v924_v42, %v924_v42  ;;  %v682_v41 = vld [vmem:[%s1713_s20 + $0x358] sm:$0xff] }
  0xb6   : > { %v810_v42 = vld [vmem:[%s1718_s23 + $0x358] sm:$0xff] }
  0xb7   : > { %v1167_v63 = vadd.f32 %v1166_v58, %v1039_v52  ;;  %v926_v52 = vsub.f32 %v670_v45, %v798_v46  ;;  %v1053_v58 = vmul.f32 %v925_v47, %v925_v47  ;;  %v683_v46 = vld [vmem:[%s1713_s20 + $0x360] sm:$0xff] }
  0xb8   : > { %v811_v47 = vld [vmem:[%s1718_s23 + $0x360] sm:$0xff] }
  0xb9   : > { %v1168_v4 = vadd.f32 %v1167_v63, %v1040_v57  ;;  %v927_v57 = vsub.f32 %v671_v50, %v799_v51  ;;  %v1054_v63 = vmul.f32 %v926_v52, %v926_v52  ;;  %v684_v51 = vld [vmem:[%s1713_s20 + $0x368] sm:$0xff] }
  0xba   : > { %v812_v52 = vld [vmem:[%s1718_s23 + $0x368] sm:$0xff] }
  0xbb   : > { %v1169_v9 = vadd.f32 %v1168_v4, %v1041_v62  ;;  %v928_v62 = vsub.f32 %v672_v55, %v800_v56  ;;  %v1055_v4 = vmul.f32 %v927_v57, %v927_v57  ;;  %v685_v56 = vld [vmem:[%s1713_s20 + $0x370] sm:$0xff] }
  0xbc   : > { %v813_v57 = vld [vmem:[%s1718_s23 + $0x370] sm:$0xff] }
  0xbd   : > { %v1170_v14 = vadd.f32 %v1169_v9, %v1042_v3  ;;  %v929_v3 = vsub.f32 %v673_v60, %v801_v61  ;;  %v1056_v9 = vmul.f32 %v928_v62, %v928_v62  ;;  %v686_v61 = vld [vmem:[%s1713_s20 + $0x378] sm:$0xff] }
  0xbe   : > { %v814_v62 = vld [vmem:[%s1718_s23 + $0x378] sm:$0xff] }
  0xbf   : > { %v1171_v19 = vadd.f32 %v1170_v14, %v1043_v8  ;;  %v930_v8 = vsub.f32 %v674_v1, %v802_v2  ;;  %v1057_v14 = vmul.f32 %v929_v3, %v929_v3  ;;  %v687_v2 = vld [vmem:[%s1713_s20 + $0x380] sm:$0xff] }
  0xc0   : > { %v815_v3 = vld [vmem:[%s1718_s23 + $0x380] sm:$0xff] }
  0xc1   : > { %v1172_v24 = vadd.f32 %v1171_v19, %v1044_v13  ;;  %v931_v13 = vsub.f32 %v675_v6, %v803_v7  ;;  %v1058_v19 = vmul.f32 %v930_v8, %v930_v8  ;;  %v688_v7 = vld [vmem:[%s1713_s20 + $0x388] sm:$0xff] }
  0xc2   : > { %v816_v8 = vld [vmem:[%s1718_s23 + $0x388] sm:$0xff] }
  0xc3   : > { %v1173_v29 = vadd.f32 %v1172_v24, %v1045_v18  ;;  %v932_v18 = vsub.f32 %v676_v11, %v804_v12  ;;  %v1059_v24 = vmul.f32 %v931_v13, %v931_v13  ;;  %v689_v12 = vld [vmem:[%s1713_s20 + $0x390] sm:$0xff] }
  0xc4   : > { %v817_v13 = vld [vmem:[%s1718_s23 + $0x390] sm:$0xff] }
  0xc5   : > { %v1174_v34 = vadd.f32 %v1173_v29, %v1046_v23  ;;  %v933_v23 = vsub.f32 %v677_v16, %v805_v17  ;;  %v1060_v29 = vmul.f32 %v932_v18, %v932_v18  ;;  %v690_v17 = vld [vmem:[%s1713_s20 + $0x398] sm:$0xff] }
  0xc6   : > { %v818_v18 = vld [vmem:[%s1718_s23 + $0x398] sm:$0xff] }
  0xc7   : > { %v1175_v39 = vadd.f32 %v1174_v34, %v1047_v28  ;;  %v934_v28 = vsub.f32 %v678_v21, %v806_v22  ;;  %v1061_v34 = vmul.f32 %v933_v23, %v933_v23  ;;  %v691_v22 = vld [vmem:[%s1713_s20 + $0x3a0] sm:$0xff] }
  0xc8   : > { %v819_v23 = vld [vmem:[%s1718_s23 + $0x3a0] sm:$0xff] }
  0xc9   : > { %v1176_v44 = vadd.f32 %v1175_v39, %v1048_v33  ;;  %v935_v33 = vsub.f32 %v679_v26, %v807_v27  ;;  %v1062_v39 = vmul.f32 %v934_v28, %v934_v28  ;;  %v692_v27 = vld [vmem:[%s1713_s20 + $0x3a8] sm:$0xff] }
  0xca   : > { %v820_v28 = vld [vmem:[%s1718_s23 + $0x3a8] sm:$0xff] }
  0xcb   : > { %v1177_v49 = vadd.f32 %v1176_v44, %v1049_v38  ;;  %v936_v38 = vsub.f32 %v680_v31, %v808_v32  ;;  %v1063_v44 = vmul.f32 %v935_v33, %v935_v33  ;;  %v693_v32 = vld [vmem:[%s1713_s20 + $0x3b0] sm:$0xff] }
  0xcc   : > { %v821_v33 = vld [vmem:[%s1718_s23 + $0x3b0] sm:$0xff] }
  0xcd   : > { %v1178_v54 = vadd.f32 %v1177_v49, %v1050_v43  ;;  %v937_v43 = vsub.f32 %v681_v36, %v809_v37  ;;  %v1064_v49 = vmul.f32 %v936_v38, %v936_v38  ;;  %v694_v37 = vld [vmem:[%s1713_s20 + $0x3b8] sm:$0xff] }
  0xce   : > { %v822_v38 = vld [vmem:[%s1718_s23 + $0x3b8] sm:$0xff] }
  0xcf   : > { %v1179_v59 = vadd.f32 %v1178_v54, %v1051_v48  ;;  %v938_v48 = vsub.f32 %v682_v41, %v810_v42  ;;  %v1065_v54 = vmul.f32 %v937_v43, %v937_v43  ;;  %v695_v42 = vld [vmem:[%s1713_s20 + $0x3c0] sm:$0xff] }
  0xd0   : > { %v823_v43 = vld [vmem:[%s1718_s23 + $0x3c0] sm:$0xff] }
  0xd1   : > { %v1180_v0 = vadd.f32 %v1179_v59, %v1052_v53  ;;  %v939_v53 = vsub.f32 %v683_v46, %v811_v47  ;;  %v1066_v59 = vmul.f32 %v938_v48, %v938_v48  ;;  %v696_v47 = vld [vmem:[%s1713_s20 + $0x3c8] sm:$0xff] }
  0xd2   : > { %v824_v48 = vld [vmem:[%s1718_s23 + $0x3c8] sm:$0xff] }
  0xd3   : > { %v1181_v5 = vadd.f32 %v1180_v0, %v1053_v58  ;;  %v940_v58 = vsub.f32 %v684_v51, %v812_v52  ;;  %v1067_v0 = vmul.f32 %v939_v53, %v939_v53  ;;  %v697_v52 = vld [vmem:[%s1713_s20 + $0x3d0] sm:$0xff] }
  0xd4   : > { %v825_v53 = vld [vmem:[%s1718_s23 + $0x3d0] sm:$0xff] }
  0xd5   : > { %v1182_v10 = vadd.f32 %v1181_v5, %v1054_v63  ;;  %v941_v63 = vsub.f32 %v685_v56, %v813_v57  ;;  %v1068_v5 = vmul.f32 %v940_v58, %v940_v58  ;;  %v698_v57 = vld [vmem:[%s1713_s20 + $0x3d8] sm:$0xff] }
  0xd6   : > { %v826_v58 = vld [vmem:[%s1718_s23 + $0x3d8] sm:$0xff] }
  0xd7   : > { %v1183_v15 = vadd.f32 %v1182_v10, %v1055_v4  ;;  %v942_v4 = vsub.f32 %v686_v61, %v814_v62  ;;  %v1069_v10 = vmul.f32 %v941_v63, %v941_v63  ;;  %v699_v62 = vld [vmem:[%s1713_s20 + $0x3e0] sm:$0xff] }
  0xd8   : > { %v827_v63 = vld [vmem:[%s1718_s23 + $0x3e0] sm:$0xff] }
  0xd9   : > { %v1184_v20 = vadd.f32 %v1183_v15, %v1056_v9  ;;  %v943_v9 = vsub.f32 %v687_v2, %v815_v3  ;;  %v1070_v15 = vmul.f32 %v942_v4, %v942_v4  ;;  %v700_v3 = vld [vmem:[%s1713_s20 + $0x3e8] sm:$0xff] }
  0xda   : > { %v828_v4 = vld [vmem:[%s1718_s23 + $0x3e8] sm:$0xff] }
  0xdb   : > { %v1185_v25 = vadd.f32 %v1184_v20, %v1057_v14  ;;  %v944_v14 = vsub.f32 %v688_v7, %v816_v8  ;;  %v1071_v20 = vmul.f32 %v943_v9, %v943_v9  ;;  %v701_v8 = vld [vmem:[%s1713_s20 + $0x3f0] sm:$0xff] }
  0xdc   : > { %v829_v9 = vld [vmem:[%s1718_s23 + $0x3f0] sm:$0xff] }
  0xdd   : > { %v1186_v30 = vadd.f32 %v1185_v25, %v1058_v19  ;;  %v945_v19 = vsub.f32 %v689_v12, %v817_v13  ;;  %v1072_v25 = vmul.f32 %v944_v14, %v944_v14  ;;  %v702_v13 = vld [vmem:[%s1713_s20 + $0x3f8] sm:$0xff] }
  0xde   : > { %v830_v14 = vld [vmem:[%s1718_s23 + $0x3f8] sm:$0xff] }
  0xdf   : > { %v1187_v35 = vadd.f32 %v1186_v30, %v1059_v24  ;;  %v946_v24 = vsub.f32 %v690_v17, %v818_v18  ;;  %v1073_v30 = vmul.f32 %v945_v19, %v945_v19  ;;  %v958_v18 = vsub.f32 %v702_v13, %v830_v14 }
  0xe1   : > { %v1188_v40 = vadd.f32 %v1187_v35, %v1060_v29  ;;  %v947_v29 = vsub.f32 %v691_v22, %v819_v23  ;;  %v1074_v35 = vmul.f32 %v946_v24, %v946_v24  ;;  %v1086_v23 = vmul.f32 %v958_v18, %v958_v18 }
  0xe3   : > { %v1189_v45 = vadd.f32 %v1188_v40, %v1061_v34  ;;  %v948_v34 = vsub.f32 %v692_v27, %v820_v28  ;;  %v1075_v40 = vmul.f32 %v947_v29, %v947_v29 }
  0xe5   : > { %v1190_v50 = vadd.f32 %v1189_v45, %v1062_v39  ;;  %v949_v39 = vsub.f32 %v693_v32, %v821_v33  ;;  %v1076_v45 = vmul.f32 %v948_v34, %v948_v34 }
  0xe7   : > { %v1191_v55 = vadd.f32 %v1190_v50, %v1063_v44  ;;  %v950_v44 = vsub.f32 %v694_v37, %v822_v38  ;;  %v1077_v50 = vmul.f32 %v949_v39, %v949_v39 }
  0xe9   : > { %v1192_v60 = vadd.f32 %v1191_v55, %v1064_v49  ;;  %v951_v49 = vsub.f32 %v695_v42, %v823_v43  ;;  %v1078_v55 = vmul.f32 %v950_v44, %v950_v44 }
  0xeb   : > { %v1193_v1 = vadd.f32 %v1192_v60, %v1065_v54  ;;  %v952_v54 = vsub.f32 %v696_v47, %v824_v48  ;;  %v1079_v60 = vmul.f32 %v951_v49, %v951_v49 }
  0xed   : > { %v1194_v6 = vadd.f32 %v1193_v1, %v1066_v59  ;;  %v953_v59 = vsub.f32 %v697_v52, %v825_v53  ;;  %v1080_v1 = vmul.f32 %v952_v54, %v952_v54 }
  0xef   : > { %v1195_v11 = vadd.f32 %v1194_v6, %v1067_v0  ;;  %v954_v0 = vsub.f32 %v698_v57, %v826_v58  ;;  %v1081_v6 = vmul.f32 %v953_v59, %v953_v59 }
  0xf1   : > { %v1196_v16 = vadd.f32 %v1195_v11, %v1068_v5  ;;  %v955_v5 = vsub.f32 %v699_v62, %v827_v63  ;;  %v1082_v11 = vmul.f32 %v954_v0, %v954_v0 }
  0xf3   : > { %v1197_v21 = vadd.f32 %v1196_v16, %v1069_v10  ;;  %v956_v10 = vsub.f32 %v700_v3, %v828_v4  ;;  %v1083_v16 = vmul.f32 %v955_v5, %v955_v5 }
  0xf5   : > { %v1198_v26 = vadd.f32 %v1197_v21, %v1070_v15  ;;  %v957_v15 = vsub.f32 %v701_v8, %v829_v9  ;;  %v1084_v19 = vmul.f32 %v956_v10, %v956_v10 }
  0xf7   : > { %v1199_v31 = vadd.f32 %v1198_v26, %v1071_v20  ;;  %v1085_v21 = vmul.f32 %v957_v15, %v957_v15  ;;  %v1087_v26 = vld [vmem:[#allocation2] sm:$0xff] }
  0xf9   : > { %v1200_v36 = vadd.f32 %v1199_v31, %v1072_v25 }
  0xfb   : > { %v1201_v41 = vadd.f32 %v1200_v36, %v1073_v30 }
  0xfd   : > { %v1202_v46 = vadd.f32 %v1201_v41, %v1074_v35 }
  0xff   : > { %v1203_v51 = vadd.f32 %v1202_v46, %v1075_v40 }
 0x101   : > { %v1204_v56 = vadd.f32 %v1203_v51, %v1076_v45 }
 0x103   : > { %v1205_v61 = vadd.f32 %v1204_v56, %v1077_v50 }
 0x105   : > { %v1206_v2 = vadd.f32 %v1205_v61, %v1078_v55 }
 0x107   : > { %v1207_v7 = vadd.f32 %v1206_v2, %v1079_v60 }
 0x109   : > { %v1208_v12 = vadd.f32 %v1207_v7, %v1080_v1 }
 0x10b   : > { %v1209_v17 = vadd.f32 %v1208_v12, %v1081_v6 }
 0x10d   : > { %v1210_v20 = vadd.f32 %v1209_v17, %v1082_v11 }
 0x10f   : > { %v1211_v22 = vadd.f32 %v1210_v20, %v1083_v16 }
 0x111   : > { %v1212_v24 = vadd.f32 %v1211_v22, %v1084_v19 }
 0x113   : > { %v1213_v25 = vadd.f32 %v1212_v24, %v1085_v21 }
 0x115   : > { %v1214_v27 = vadd.f32 %v1213_v25, %v1086_v23 }
 0x117   : > { %v1215_v28 = vadd.f32 %v1214_v27, %v1087_v26 }
 0x119   : > { %1216 = vst [vmem:[#allocation2] sm:$0xff] %v1215_v28 }
 0x11a PF: > { %p1249_p7 = scmp.eq.s32.totalorder %s1624_s30, 0 }
 0x11b   : > { %v1254_v29 = vld [vmem:[%s2039_s1] sm:$0x3] (%p1249_p7)  ;;  %vm1256_vm0 = vcmask (%p1249_p7), 254976   ;;  %v1635_v31 = vmov (%p1249_p7), 0   ;;  %v1268_v36 = vlaneseq (%p1249_p7)  ;;  %v1322_v48 = vld [vmem:[#allocation2 + $0x8] sm:$0xff] (%p1249_p7)  ;;  %vm1280_vm2 = vcmask (%p1249_p7), 1024  }
 0x11c   : > { %1253 = sbr.rel (!%p1249_p7) target bundleno = 820 (0x334), region = 68  ;;  %v1257_v30 = vsel (%p1249_p7), %vm1256_vm0, %v1254_v29, -inf  ;;  %1605 = vset.pattern.permute.xlu0 (%p1249_p7), %v1635_v31  ;;  %v1270_v32 = vld [vmem:[%s2038_s0] sm:$0x3] (%p1249_p7)  ;;  %v1335_v55 = vld [vmem:[#allocation2 + $0x10] sm:$0xff] (%p1249_p7) }
 0x11d   : > { %1258 = vmax.xlane.f32.xlu0 (%p1249_p7), %v1257_v30  ;;  %v1269_v37 = vand.u32 (%p1249_p7), 127, %v1268_v36  ;;  %v1255_v39 = vld [vmem:[%s2040_s2] sm:$0x3] (%p1249_p7) }
 0x11e   : > { %v1294_v40 = vsub.f32 (%p1249_p7), %v1254_v29, %v1255_v39 }
 0x120   : > { %v1295_v44 = vmul.f32 (%p1249_p7), %v1294_v40, %v1294_v40  ;;  %v1309_v47 = vld [vmem:[#allocation2] sm:$0xff] (%p1249_p7) }
 0x122   : > { %v1296_v46 = vsel (%p1249_p7), %vm1256_vm0, %v1295_v44, 0.0 }
 0x133   : > { %1272 = vperm.xlu0 %1605, %v1270_v32  }
 0x1aa   : > { %v1259_v33 = vpop.xlane.xlu0 %1258 }
 0x1ab   : > { %v1260_v34 = vsub.f32 %v1254_v29, %v1259_v33 }
 0x1ad   : > { %v1261_v35 = vmul.f32 1.442695, %v1260_v34 }
 0x1af   : > { %1606 = vpow2.f32 %v1261_v35 }
 0x1b2   : > { %v1273_v38 = vpop.permute.xlu0 %1272 }
 0x1b3   : > { %vm1274_vm1 = vcmp.eq.s32.totalorder %v1269_v37, %v1273_v38 }
 0x1b4   : > { %v1275_v43 = vsel %vm1274_vm1, %v1260_v34, 0.0 }
 0x1b5   : > { %v1276_v45 = vsel %vm1256_vm0, %v1275_v43, 0.0 }
 0x1b9   : > { %v1607_v41 = vpop.eup %1606 }
 0x1ba   : > { %v1263_v42 = vsel %vm1256_vm0, %v1607_v41, 0.0 }
 0x1bb   : > { %1264 = vadd.xlane.f32.xlu1 %v1263_v42 }
 0x1bf   : > { %1277 = vadd.xlane.f32.xlu1 %v1276_v45 }
 0x1c3   : > { %1297 = vadd.xlane.f32.xlu1 %v1296_v46 }
 0x1c7   : > { %1310 = vadd.xlane.f32.xlu1 %v1309_v47 }
 0x1cb   : > { %1323 = vadd.xlane.f32.xlu1 %v1322_v48 }
 0x248   : > { %v1265_v49 = vpop.xlane.xlu1 %1264 }
 0x249   : > { %1608 = vlog2.f32 %v1265_v49 }
 0x24c   : > { %v1278_v52 = vpop.xlane.xlu1 %1277 }
 0x250   : > { %v1298_v56 = vpop.xlane.xlu1 %1297 }
 0x251   : > { %v1299_v59 = vrot.slane %v1298_v56, 4 }
 0x253   : > { %v1609_v50 = vpop.eup %1608  ;;  %v1300_v62 = vadd.f32 %v1299_v59, %v1298_v56 }
 0x254   : > { %v1267_v51 = vmul.f32 0.6931472, %v1609_v50  ;;  %v1311_v57 = vpop.xlane.xlu1 %1310 }
 0x255   : > { %v1312_v60 = vrot.slane %v1311_v57, 4  ;;  %v1301_v1 = vrot.slane %v1300_v62, 2 }
 0x256   : > { %v1279_v53 = vsub.f32 %v1267_v51, %v1278_v52 }
 0x257   : > { %v1313_v63 = vadd.f32 %v1312_v60, %v1311_v57  ;;  %v1302_v8 = vadd.f32 %v1301_v1, %v1300_v62 }
 0x258   : > { %v1281_v54 = vsel %vm1280_vm2, %v1279_v53, 0.0  ;;  %v1324_v58 = vpop.xlane.xlu1 %1323 }
 0x259   : > { %1282 = vadd.xlane.f32.xlu1 %v1281_v54  ;;  %v1325_v61 = vrot.slane %v1324_v58, 4  ;;  %v1314_v3 = vrot.slane %v1313_v63, 2  ;;  %v1303_v15 = vrot.slane %v1302_v8, 1 }
 0x25b   : > { %v1326_v0 = vadd.f32 %v1325_v61, %v1324_v58  ;;  %v1315_v11 = vadd.f32 %v1314_v3, %v1313_v63  ;;  %v1304_v22 = vadd.f32 %v1303_v15, %v1302_v8 }
 0x25d   : > { %1336 = vadd.xlane.f32.xlu1 %v1335_v55  ;;  %v1327_v5 = vrot.slane %v1326_v0, 2  ;;  %v1316_v18 = vrot.slane %v1315_v11, 1 }
 0x25f   : > { %v1328_v12 = vadd.f32 %v1327_v5, %v1326_v0  ;;  %v1317_v23 = vadd.f32 %v1316_v18, %v1315_v11 }
 0x261   : > { %v1329_v19 = vrot.slane %v1328_v12, 1 }
 0x263   : > { %v1330_v25 = vadd.f32 %v1329_v19, %v1328_v12 }
 0x2e6   : > { %v1283_v2 = vpop.xlane.xlu1 %1282 }
 0x2e7   : > { %v1284_v4 = vrot.slane %v1283_v2, 4 }
 0x2e9   : > { %v1285_v6 = vadd.f32 %v1284_v4, %v1283_v2 }
 0x2ea   : > { %v1337_v7 = vpop.xlane.xlu1 %1336 }
 0x2eb   : > { %v1286_v9 = vrot.slane %v1285_v6, 2  ;;  %v1338_v10 = vrot.slane %v1337_v7, 4 }
 0x2ed   : > { %v1339_v13 = vadd.f32 %v1338_v10, %v1337_v7  ;;  %v1287_v14 = vadd.f32 %v1286_v9, %v1285_v6 }
 0x2ef   : > { %v1340_v16 = vrot.slane %v1339_v13, 2  ;;  %v1288_v17 = vrot.slane %v1287_v14, 1 }
 0x2f1   : > { %v1341_v20 = vadd.f32 %v1340_v16, %v1339_v13  ;;  %v1289_v21 = vadd.f32 %v1288_v17, %v1287_v14 }
 0x2f3   : > { %1563 = vpush %v1289_v21  ;;  %v1342_v24 = vrot.slane %v1341_v20, 1 }
 0x2f4   : > { %1565 = vpush %v1304_v22 }
 0x2f5   : > { %1567 = vpush %v1317_v23  ;;  %v1343_v26 = vadd.f32 %v1342_v24, %v1341_v20 }
 0x2f6   : > { %1569 = vpush %v1330_v25 }
 0x2f7   : > { %1571 = vpush %v1343_v26 }
 0x324   : > { %s1564_s23 = spop %1563 }
 0x325   : > { %s1566_s26 = spop %1565  ;;  %s1293_s25 = smul.f32 0.5, %s1564_s23 }
 0x326   : > { %s1306_s27 = smul.f32 0.015625, %s1566_s26  ;;  %s1568_s28 = spop %1567 }
 0x327   : > { %s1319_s29 = smul.f32 7.6293945e-06, %s1568_s28  ;;  %s1570_s14 = spop %1569 }
 0x328   : > { %s1572_s18 = spop %1571  ;;  %s1332_s21 = smul.f32 0.00024414063, %s1570_s14 }
 0x329   : > { %s1345_s16 = smul.f32 0.004761905, %s1572_s18 }
 0x32a   : > { %s1307_s22 = smul.f32 0.5, %s1306_s27  ;;  %s1333_s24 = sadd.f32 %s1332_s21, %s1319_s29 }
 0x32c   : > { %s1346_s3 = sadd.f32 %s1345_s16, %s1333_s24 }
 0x32d   : > { %s1308_s12 = sadd.f32 %s1307_s22, %s1293_s25 }
 0x32e   : > { %s1347_s13 = smul.f32 0.1, %s1346_s3 }
 0x330   : > { %s1348_s15 = sadd.f32 %s1347_s13, %s1308_s12 }
 0x332   : > { %v1349_v27 = vstv %s1348_s15 }
 0x333   : > { %1350 = vst [vmem:[%s1733_s19] sm:$0xff] %v1349_v27 }
 0x334 PF: > { %p1351_p8 = scmp.gt.s32.totalorder %s1624_s30, 0 }
 0x335   : > { %v1382_v28 = vld [vmem:[#allocation2 + $0x10] sm:$0xff] (%p1351_p8)  ;;  %v1356_v29 = vld [vmem:[#allocation2] sm:$0xff] (%p1351_p8)  ;;  %v1369_v30 = vld [vmem:[#allocation2 + $0x8] sm:$0xff] (%p1351_p8) }
 0x336   : > { %1355 = sbr.rel (!%p1351_p8) target bundleno = 1040 (0x410), region = 72  ;;  %1383 = vadd.xlane.f32.xlu1 (%p1351_p8), %v1382_v28  ;;  %1357 = vadd.xlane.f32.xlu0 (%p1351_p8), %v1356_v29 }
 0x33a   : > { %1370 = vadd.xlane.f32.xlu0 (%p1351_p8), %v1369_v30 }
 0x3c3   : > { %v1384_v31 = vpop.xlane.xlu1 %1383  ;;  %v1358_v32 = vpop.xlane.xlu0 %1357 }
 0x3c4   : > { %v1385_v33 = vrot.slane %v1384_v31, 4  ;;  %v1359_v34 = vrot.slane %v1358_v32, 4 }
 0x3c6   : > { %v1386_v35 = vadd.f32 %v1385_v33, %v1384_v31  ;;  %v1360_v36 = vadd.f32 %v1359_v34, %v1358_v32 }
 0x3c7   : > { %v1371_v37 = vpop.xlane.xlu0 %1370 }
 0x3c8   : > { %v1387_v38 = vrot.slane %v1386_v35, 2  ;;  %v1361_v39 = vrot.slane %v1360_v36, 2  ;;  %v1372_v40 = vrot.slane %v1371_v37, 4 }
 0x3ca   : > { %v1373_v41 = vadd.f32 %v1372_v40, %v1371_v37  ;;  %v1362_v42 = vadd.f32 %v1361_v39, %v1360_v36  ;;  %v1388_v43 = vadd.f32 %v1387_v38, %v1386_v35 }
 0x3cc   : > { %v1374_v44 = vrot.slane %v1373_v41, 2  ;;  %v1363_v45 = vrot.slane %v1362_v42, 1  ;;  %v1389_v48 = vrot.slane %v1388_v43, 1 }
 0x3ce   : > { %v1375_v46 = vadd.f32 %v1374_v44, %v1373_v41  ;;  %v1364_v47 = vadd.f32 %v1363_v45, %v1362_v42  ;;  %v1390_v51 = vadd.f32 %v1389_v48, %v1388_v43 }
 0x3d0   : > { %1573 = vpush %v1364_v47  ;;  %v1376_v49 = vrot.slane %v1375_v46, 1 }
 0x3d2   : > { %v1377_v50 = vadd.f32 %v1376_v49, %v1375_v46 }
 0x3d4   : > { %1575 = vpush %v1377_v50 }
 0x3d5   : > { %1577 = vpush %v1390_v51 }
 0x401   : > { %s1574_s30 = spop %1573 }
 0x402   : > { %s1366_s17 = smul.f32 7.6293945e-06, %s1574_s30 }
 0x405   : > { %s1576_s20 = spop %1575 }
 0x406   : > { %s1379_s23 = smul.f32 0.00024414063, %s1576_s20  ;;  %s1578_s26 = spop %1577 }
 0x407   : > { %s1392_s28 = smul.f32 0.004761905, %s1578_s26 }
 0x408   : > { %s1380_s27 = sadd.f32 %s1379_s23, %s1366_s17 }
 0x40a   : > { %s1393_s29 = sadd.f32 %s1392_s28, %s1380_s27 }
 0x40c   : > { %s1394_s14 = smul.f32 0.1, %s1393_s29 }
 0x40e   : > { %v1395_v52 = vstv %s1394_s14 }
 0x40f   : > { %1396 = vst [vmem:[%s1733_s19] sm:$0xff] %v1395_v52 }
 0x410 PF: > { %s19_s11 = sadd.s32 1, %s1632_s11   ;;  %s2051_s18 = sld [smem:[#allocation3_spill]] }
 0x411   : > { %p16_p9 = scmp.ge.s32.totalorder %s19_s11, 4   ;;  %s2052_s30 = smov %s1628_s10 }
 0x413   :  { %18 = sbr.rel (!%p16_p9) target bundleno = 2 (0x2), region = 123 }
 0x416   : > { %s2053_s10 = smov %s2051_s18 }

</bundles_post_ra>
